<compile_context>
chip_gen: v7x
topology: tpu7x:2x2x1
jax: 0.10.0
libtpu: 0.0.40
codegen_flags: <defaults>
</compile_context>

<pallas_src>
import functools

import jax
import jax.numpy as jnp
from jax.experimental import pallas as pl
from jax.experimental.pallas import tpu as pltpu


_MASK_VALUE = -1e30      # plain Python float -> jaxpr literal (NOT a captured array)
_MAX_TQ = 128            # query/key tile rows (full T if T is small / not divisible)
_MAX_FFN_CHUNK = 512     # FFN hidden columns per grid step


def _layernorm(z, g, b, eps=1e-5):
    # f32 elementwise math (matches nn.LayerNorm: biased variance, eps inside sqrt).
    mu = jnp.mean(z, axis=-1, keepdims=True)
    var = jnp.mean((z - mu) ** 2, axis=-1, keepdims=True)
    return (z - mu) * jax.lax.rsqrt(var + eps) * g + b


def transformer_block_kernel(
    n_heads, TQ,
    x_ref,                 # (1, T, C)   f32   full sequence for this batch element
    g1_ref, b1_ref,        # (1, C)      f32   LayerNorm 1
    wqkv_ref,              # (C, 3C)     bf16  [q heads | k heads | v heads]
    g2_ref, b2_ref,        # (1, C)      f32   LayerNorm 2
    w1_ref, bf1_ref,       # (C, FCH) bf16, (1, FCH) f32   (one hidden chunk)
    w2_ref, bf2_ref,       # (FCH, C) bf16, (1, C)  f32
    o_ref,                 # (1, TQ, C)
    x1_scr,                # VMEM (TQ, C) f32   attention residual
    xn2_scr,               # VMEM (TQ, C) bf16  LN2(x1) (FFN input)
    ff_scr,                # VMEM (TQ, C) f32   FFN accumulator
):
    qi = pl.program_id(1)          # query-tile index
    fj = pl.program_id(2)          # FFN hidden-chunk index
    n_ff = pl.num_programs(2)
    T = x_ref.shape[1]
    C = x_ref.shape[2]
    hs = C // n_heads
    scale = 1.0 / (C ** 0.5)       # PyTorch module scales by embed_size, not head_size

    # ---------- phase 1 (first FFN chunk only): causal attention for this q tile ----------
    @pl.when(fj == 0)
    def _attention():
        q_start = pl.multiple_of(qi * TQ, TQ)
        x_q = x_ref[0, pl.ds(q_start, TQ), :].astype(jnp.float32)            # (TQ, C)
        xn_q = _layernorm(x_q, g1_ref[0], b1_ref[0]).astype(jnp.bfloat16)
        q = jnp.dot(xn_q, wqkv_ref[:, :C], preferred_element_type=jnp.float32)
        # fold the softmax scale into q: O(TQ*C) multiplies instead of O(nh*TQ*TK)
        q = (q * scale).reshape(TQ, n_heads, hs).astype(jnp.bfloat16)

        def kv_step(kj, carry):
            m, l, acc = carry
            k_start = pl.multiple_of(kj * TQ, TQ)
            x_k = x_ref[0, pl.ds(k_start, TQ), :].astype(jnp.float32)        # (TK, C)
            xn_k = _layernorm(x_k, g1_ref[0], b1_ref[0]).astype(jnp.bfloat16)
            k_t = jnp.dot(xn_k, wqkv_ref[:, C:2 * C],
                          preferred_element_type=jnp.float32)
            v_t = jnp.dot(xn_k, wqkv_ref[:, 2 * C:],
                          preferred_element_type=jnp.float32)
            k_t = k_t.reshape(TQ, n_heads, hs).astype(jnp.bfloat16)
            v_t = v_t.reshape(TQ, n_heads, hs).astype(jnp.bfloat16)

            s = jnp.einsum('qnd,knd->nqk', q, k_t,
                           preferred_element_type=jnp.float32)               # (nh, TQ, TK)
            row = q_start + jax.lax.broadcasted_iota(jnp.int32, (TQ, TQ), 0)
            col = k_start + jax.lax.broadcasted_iota(jnp.int32, (TQ, TQ), 1)
            s = jnp.where((row >= col)[None, :, :], s, _MASK_VALUE)

            m_new = jnp.maximum(m, jnp.max(s, axis=-1, keepdims=True))
            alpha = jnp.exp(m - m_new)
            p = jnp.exp(s - m_new)
            l_new = alpha * l + jnp.sum(p, axis=-1, keepdims=True)
            acc_new = alpha * acc + jnp.einsum(
                'nqk,knd->nqd', p.astype(jnp.bfloat16), v_t,
                preferred_element_type=jnp.float32)                          # heads-leading
            return m_new, l_new, acc_new

        m0 = jnp.full((n_heads, TQ, 1), _MASK_VALUE, jnp.float32)
        l0 = jnp.zeros((n_heads, TQ, 1), jnp.float32)
        a0 = jnp.zeros((n_heads, TQ, hs), jnp.float32)
        # causal: with TK == TQ only key tiles kj <= qi contribute
        _, l, acc = jax.lax.fori_loop(0, qi + 1, kv_step, (m0, l0, a0))

        ctx = acc * (1.0 / l)                               # exact softmax normalization
        ctx = jnp.transpose(ctx, (1, 0, 2)).reshape(TQ, C)  # merge heads back to (TQ, C)
        # attention dropout -> identity in eval mode
        x1 = x_q + ctx
        x1_scr[...] = x1
        xn2_scr[...] = _layernorm(x1, g2_ref[0], b2_ref[0]).astype(jnp.bfloat16)
        ff_scr[...] = jnp.zeros_like(ff_scr)

    # ---------- phase 2 (every step): one streamed hidden-dim chunk of the FFN ----------
    h1 = jnp.dot(xn2_scr[...], w1_ref[...], preferred_element_type=jnp.float32)
    h1 = jnp.maximum(h1 + bf1_ref[...], 0.0)                # Linear + ReLU (chunk columns)
    ff_scr[...] += jnp.dot(h1.astype(jnp.bfloat16), w2_ref[...],
                           preferred_element_type=jnp.float32)

    # ---------- finalize (last hidden chunk): bias + residual + output ----------
    @pl.when(fj == n_ff - 1)
    def _finalize():
        # FFN Dropout(0.1) -> identity in eval mode
        o_ref[0] = (x1_scr[...] + ff_scr[...] + bf2_ref[...]).astype(o_ref.dtype)


def _vmem_limit_bytes(T, TQ, C, H, FCH, n_heads):
    """Scoped-VMEM budget from the actual resident footprint, capped per-generation."""
    bf16, f32 = 2, 4
    hs = C // n_heads
    weights = (3 * C * C) * bf16                              # fused QKV (single-buffered)
    ffw = 2 * (C * FCH + FCH * C) * bf16 + 2 * FCH * f32      # streamed FFN chunks (x2 buf)
    io = 2 * T * C * f32 + 2 * TQ * C * f32                   # x block + out block
    scratch = TQ * C * (f32 + bf16 + f32)
    interm = (2 * TQ * C * (f32 + bf16)                       # q / key-tile slabs + LN temps
              + 3 * TQ * C * bf16                             # q, k_t, v_t
              + 3 * n_heads * TQ * TQ * f32                   # scores / probs / temps
              + 3 * n_heads * TQ * (hs + 2) * f32             # online-softmax carries
              + 2 * TQ * FCH * f32)                           # FFN hidden chunk
    total = weights + ffw + io + scratch + interm + (8 << 20)
    try:
        cap = pltpu.get_tpu_info().vmem_capacity_bytes        # generation-aware ceiling
    except Exception:
        cap = 64 << 20                                        # conservative (v7x per-core)
    return int(min(max(total, 32 << 20), int(cap * 0.85)))


def transformer_block(x, params):
    """x: (B, T, C) float32. params: packed kernel params (see pack_params)."""
    B, T, C = x.shape
    n_heads = params["n_heads"]
    H = params["w1"].shape[1]

    TQ = _MAX_TQ if (T > _MAX_TQ and T % _MAX_TQ == 0) else T
    FCH = _MAX_FFN_CHUNK if (H > _MAX_FFN_CHUNK and H % _MAX_FFN_CHUNK == 0) else H
    NQ = T // TQ
    NF = H // FCH

    def small(arr):
        return pl.BlockSpec(arr.shape, lambda b, qi, fj, _n=arr.ndim: (0,) * _n)

    def resident(arr):
        # Constant-index weight: single buffering (double-buffering a never-changing
        # block only doubles its VMEM cost).  Fall back if pipeline_mode is absent.
        idx = lambda b, qi, fj, _n=arr.ndim: (0,) * _n
        try:
            return pl.BlockSpec(arr.shape, idx, pipeline_mode=pl.Buffered(1))
        except (TypeError, AttributeError):
            return pl.BlockSpec(arr.shape, idx)

    in_specs = [
        pl.BlockSpec((1, T, C), lambda b, qi, fj: (b, 0, 0)),   # x (fetched once per b)
        small(params["g1"]), small(params["b1"]),               # ln1 gamma, beta
        resident(params["wqkv"]),                               # fused QKV weight (bf16)
        small(params["g2"]), small(params["b2"]),               # ln2 gamma, beta
        pl.BlockSpec((C, FCH), lambda b, qi, fj: (0, fj)),      # W1 hidden-chunk stream
        pl.BlockSpec((1, FCH), lambda b, qi, fj: (0, fj)),      # b1 hidden-chunk stream
        pl.BlockSpec((FCH, C), lambda b, qi, fj: (fj, 0)),      # W2 hidden-chunk stream
        small(params["bf2"]),                                   # b2
    ]
    out_spec = pl.BlockSpec((1, TQ, C), lambda b, qi, fj: (b, qi, 0))

    kernel = functools.partial(transformer_block_kernel, n_heads, TQ)

    return pl.pallas_call(
        kernel,
        out_shape=jax.ShapeDtypeStruct((B, T, C), x.dtype),
        grid_spec=pltpu.PrefetchScalarGridSpec(
            num_scalar_prefetch=0,
            grid=(B, NQ, NF),            # batch x query-tiles (parallel) x FFN chunks (arbitrary)
            in_specs=in_specs,
            out_specs=out_spec,
            scratch_shapes=[
                pltpu.VMEM((TQ, C), jnp.float32),    # x1 (attention residual)
                pltpu.VMEM((TQ, C), jnp.bfloat16),   # LN2(x1), FFN input
                pltpu.VMEM((TQ, C), jnp.float32),    # FFN accumulator
            ],
        ),
        compiler_params=pltpu.CompilerParams(
            dimension_semantics=("parallel", "parallel", "arbitrary"),
            vmem_limit_bytes=_vmem_limit_bytes(T, TQ, C, H, FCH, n_heads),
        ),
    )(
        x,
        params["g1"], params["b1"],
        params["wqkv"],
        params["g2"], params["b2"],
        params["w1"], params["bf1"],
        params["w2"], params["bf2"],
    )


def init_params(key, embed_size, n_heads):
    """Deterministic synthetic weights matching the PyTorch module's shapes.

    Per-head Linear weights (head_size, C) are stored pre-transposed as
    (n_heads, C, head_size) so y = x @ W; FF Linear weights likewise transposed.
    """
    hs = embed_size // n_heads
    C, H = embed_size, 4 * embed_size
    ks = jax.random.split(key, 8)
    std = 0.02
    return {
        "g1": jnp.ones((1, C), jnp.float32),
        "b1": jnp.zeros((1, C), jnp.float32),
        "wq": std * jax.random.normal(ks[0], (n_heads, C, hs), jnp.float32),
        "wk": std * jax.random.normal(ks[1], (n_heads, C, hs), jnp.float32),
        "wv": std * jax.random.normal(ks[2], (n_heads, C, hs), jnp.float32),
        "g2": jnp.ones((1, C), jnp.float32),
        "b2": jnp.zeros((1, C), jnp.float32),
        "w1": std * jax.random.normal(ks[3], (C, H), jnp.float32),
        "bf1": std * jax.random.normal(ks[4], (1, H), jnp.float32),
        "w2": std * jax.random.normal(ks[5], (H, C), jnp.float32),
        "bf2": std * jax.random.normal(ks[6], (1, C), jnp.float32),
    }


def pack_params(p):
    """Fuse per-head Q/K/V weights into one (C, 3C) matrix and cast matmul weights
    to bf16 (MXU operands); LN params and biases stay f32."""
    nh, C, hs = p["wq"].shape
    to_cols = lambda w: jnp.transpose(w, (1, 0, 2)).reshape(C, nh * hs)
    wqkv = jnp.concatenate([to_cols(p["wq"]), to_cols(p["wk"]), to_cols(p["wv"])],
                           axis=1)                                   # (C, 3C)
    return {
        "n_heads": nh,
        "g1": p["g1"], "b1": p["b1"], "g2": p["g2"], "b2": p["b2"],
        "wqkv": wqkv.astype(jnp.bfloat16),
        "w1": p["w1"].astype(jnp.bfloat16), "bf1": p["bf1"],
        "w2": p["w2"].astype(jnp.bfloat16), "bf2": p["bf2"],
    }


def reference(x, params):
    """Pure-JAX f32 reference of the PyTorch forward (eval mode)."""
    B, T, C = x.shape
    n_heads = params["wq"].shape[0]

    def ln(z, g, b):
        mu = jnp.mean(z, axis=-1, keepdims=True)
        var = jnp.mean((z - mu) ** 2, axis=-1, keepdims=True)
        return (z - mu) / jnp.sqrt(var + 1e-5) * g + b

    xn = ln(x, params["g1"][0], params["b1"][0])
    mask = jnp.tril(jnp.ones((T, T), bool))
    outs = []
    for h in range(n_heads):
        q = xn @ params["wq"][h]
        k = xn @ params["wk"][h]
        v = xn @ params["wv"][h]
        wei = jnp.einsum("btd,bsd->bts", q, k) / (C ** 0.5)
        wei = jnp.where(mask, wei, -jnp.inf)
        wei = jax.nn.softmax(wei, axis=-1)
        outs.append(wei @ v)
    x1 = x + jnp.concatenate(outs, axis=-1)
    xn2 = ln(x1, params["g2"][0], params["b2"][0])
    h1 = jax.nn.relu(xn2 @ params["w1"] + params["bf1"][0])
    ff = h1 @ params["w2"] + params["bf2"][0]
    return x1 + ff


if __name__ == "__main__":
    B, T, C, n_heads = 2, 8, 32, 4   # batch, block_size, embed_size, heads

    key = jax.random.PRNGKey(0)
    k_x, k_p = jax.random.split(key)
    x = jax.random.normal(k_x, (B, T, C), jnp.float32)
    raw_params = init_params(k_p, C, n_heads)
    packed_params = pack_params(raw_params)

    out = transformer_block(x, packed_params)
    out = jax.block_until_ready(out)

    ref = reference(x, raw_params)
    assert out.shape == (B, T, C)
    max_err = float(jnp.max(jnp.abs(out - ref)))
    # bf16 matmul operands (f32 accumulate) -> loose tolerance.
    assert jnp.allclose(out, ref, atol=2e-2, rtol=2e-2), f"mismatch vs ref: {max_err}"

    print("KERNEL_OK")
</pallas_src>

<mosaic_0001>
module attributes {stable_mosaic.version = 11 : i64} {
  func.func @transformer_block_kernel(%arg0: i32, %arg1: i32, %arg2: i32, %arg3: memref<1x8x32xf32, #tpu.memory_space<vmem>>, %arg4: memref<1x32xf32, #tpu.memory_space<vmem>>, %arg5: memref<1x32xf32, #tpu.memory_space<vmem>>, %arg6: memref<32x96xbf16, #tpu.memory_space<vmem>>, %arg7: memref<1x32xf32, #tpu.memory_space<vmem>>, %arg8: memref<1x32xf32, #tpu.memory_space<vmem>>, %arg9: memref<32x128xbf16, #tpu.memory_space<vmem>>, %arg10: memref<1x128xf32, #tpu.memory_space<vmem>>, %arg11: memref<128x32xbf16, #tpu.memory_space<vmem>>, %arg12: memref<1x32xf32, #tpu.memory_space<vmem>>, %arg13: memref<1x8x32xf32, #tpu.memory_space<vmem>>, %arg14: memref<8x32xf32, #tpu.memory_space<vmem>>, %arg15: memref<8x32xbf16, #tpu.memory_space<vmem>>, %arg16: memref<8x32xf32, #tpu.memory_space<vmem>>) attributes {dimension_semantics = [#tpu.dimension_semantics<parallel>, #tpu.dimension_semantics<parallel>, #tpu.dimension_semantics<arbitrary>], iteration_bounds = array<i64: 2, 1, 1>, scalar_prefetch = 0 : i64, scratch_operands = 3 : i64, tpu.core_type = #tpu.core_type<tc>, window_params = [{transform_indices = @transform_0, window_bounds = array<i64: 1, 8, 32>}, {pipeline_mode = #tpu.pipeline_mode<synchronous>, transform_indices = @transform_1, window_bounds = array<i64: 1, 32>}, {pipeline_mode = #tpu.pipeline_mode<synchronous>, transform_indices = @transform_2, window_bounds = array<i64: 1, 32>}, {pipeline_mode = #tpu.pipeline_mode<synchronous>, transform_indices = @transform_3, window_bounds = array<i64: 32, 96>}, {pipeline_mode = #tpu.pipeline_mode<synchronous>, transform_indices = @transform_4, window_bounds = array<i64: 1, 32>}, {pipeline_mode = #tpu.pipeline_mode<synchronous>, transform_indices = @transform_5, window_bounds = array<i64: 1, 32>}, {transform_indices = @transform_6, window_bounds = array<i64: 32, 128>}, {transform_indices = @transform_7, window_bounds = array<i64: 1, 128>}, {transform_indices = @transform_8, window_bounds = array<i64: 128, 32>}, {pipeline_mode = #tpu.pipeline_mode<synchronous>, transform_indices = @transform_9, window_bounds = array<i64: 1, 32>}, {transform_indices = @transform_10, window_bounds = array<i64: 1, 8, 32>}]} {
    %c0_i32 = arith.constant 0 : i32
    %0 = arith.cmpi eq, %arg2, %c0_i32 : i32
    %1 = arith.extui %0 : i1 to i32
    %c0_i32_0 = arith.constant 0 : i32
    %2 = arith.cmpi ne, %1, %c0_i32_0 : i32
    scf.if %2 {
      %c8_i32 = arith.constant 8 : i32
      %20 = arith.muli %arg1, %c8_i32 : i32
      %21 = tpu.assume_multiple %20, 8 : i32
      %c0_16 = arith.constant 0 : index
      %22 = arith.index_cast %21 : i32 to index
      %c0_17 = arith.constant 0 : index
      %23 = vector.load %arg3[%c0_16, %22, %c0_17] : memref<1x8x32xf32, #tpu.memory_space<vmem>>, vector<1x8x32xf32>
      %24 = vector.shape_cast %23 : vector<1x8x32xf32> to vector<8x32xf32>
      %c0_18 = arith.constant 0 : index
      %c0_19 = arith.constant 0 : index
      %25 = vector.load %arg4[%c0_18, %c0_19] : memref<1x32xf32, #tpu.memory_space<vmem>>, vector<1x32xf32>
      %26 = vector.shape_cast %25 : vector<1x32xf32> to vector<32xf32>
      %c0_20 = arith.constant 0 : index
      %c0_21 = arith.constant 0 : index
      %27 = vector.load %arg5[%c0_20, %c0_21] : memref<1x32xf32, #tpu.memory_space<vmem>>, vector<1x32xf32>
      %28 = vector.shape_cast %27 : vector<1x32xf32> to vector<32xf32>
      %cst_22 = arith.constant dense<0.000000e+00> : vector<8xf32>
      %29 = vector.multi_reduction <add>, %24, %cst_22 [1] : vector<8x32xf32> to vector<8xf32>
      %30 = vector.shape_cast %29 : vector<8xf32> to vector<8x1xf32>
      %cst_23 = arith.constant 3.200000e+01 : f32
      %31 = vector.broadcast %cst_23 : f32 to vector<8x1xf32>
      %32 = arith.divf %30, %31 : vector<8x1xf32>
      %33 = vector.broadcast %32 : vector<8x1xf32> to vector<8x32xf32>
      %34 = arith.subf %24, %33 : vector<8x32xf32>
      %35 = arith.mulf %34, %34 : vector<8x32xf32>
      %cst_24 = arith.constant dense<0.000000e+00> : vector<8xf32>
      %36 = vector.multi_reduction <add>, %35, %cst_24 [1] : vector<8x32xf32> to vector<8xf32>
      %37 = vector.shape_cast %36 : vector<8xf32> to vector<8x1xf32>
      %cst_25 = arith.constant 3.200000e+01 : f32
      %38 = vector.broadcast %cst_25 : f32 to vector<8x1xf32>
      %39 = arith.divf %37, %38 : vector<8x1xf32>
      %40 = vector.broadcast %32 : vector<8x1xf32> to vector<8x32xf32>
      %41 = arith.subf %24, %40 : vector<8x32xf32>
      %cst_26 = arith.constant 9.99999974E-6 : f32
      %42 = vector.broadcast %cst_26 : f32 to vector<8x1xf32>
      %43 = arith.addf %39, %42 : vector<8x1xf32>
      %44 = math.rsqrt %43 : vector<8x1xf32>
      %45 = vector.broadcast %44 : vector<8x1xf32> to vector<8x32xf32>
      %46 = arith.mulf %41, %45 : vector<8x32xf32>
      %47 = vector.shape_cast %26 : vector<32xf32> to vector<1x32xf32>
      %48 = vector.broadcast %47 : vector<1x32xf32> to vector<8x32xf32>
      %49 = arith.mulf %46, %48 : vector<8x32xf32>
      %50 = vector.shape_cast %28 : vector<32xf32> to vector<1x32xf32>
      %51 = vector.broadcast %50 : vector<1x32xf32> to vector<8x32xf32>
      %52 = arith.addf %49, %51 : vector<8x32xf32>
      %53 = arith.truncf %52 : vector<8x32xf32> to vector<8x32xbf16>
      %c0_27 = arith.constant 0 : index
      %c0_28 = arith.constant 0 : index
      %54 = vector.load %arg6[%c0_27, %c0_28] : memref<32x96xbf16, #tpu.memory_space<vmem>>, vector<32x32xbf16>
      %cst_29 = arith.constant dense<0.000000e+00> : vector<8x32xf32>
      %55 = tpu.matmul %53, %54, %cst_29 {dimension_numbers = #tpu.dot_dimension_numbers<[1], [0], [0], [1], [0, 0, 1, 1], [], []>} : vector<8x32xbf16>, vector<32x32xbf16>, vector<8x32xf32> -> vector<8x32xf32>
      %cst_30 = arith.constant 0.176776692 : f32
      %56 = vector.broadcast %cst_30 : f32 to vector<8x32xf32>
      %57 = arith.mulf %55, %56 : vector<8x32xf32>
      %58 = vector.shape_cast %57 : vector<8x32xf32> to vector<8x4x8xf32>
      %59 = arith.truncf %58 : vector<8x4x8xf32> to vector<8x4x8xbf16>
      %cst_31 = arith.constant -1.000000e+30 : f32
      %60 = vector.broadcast %cst_31 : f32 to vector<4x8x1xf32>
      %cst_32 = arith.constant 0.000000e+00 : f32
      %61 = vector.broadcast %cst_32 : f32 to vector<4x8x1xf32>
      %cst_33 = arith.constant 0.000000e+00 : f32
      %62 = vector.broadcast %cst_33 : f32 to vector<4x8x8xf32>
      %c1_i32 = arith.constant 1 : i32
      %63 = arith.addi %arg1, %c1_i32 : i32
      %c0_i32_34 = arith.constant 0 : i32
      %64 = arith.subi %63, %c0_i32_34 : i32
      %65 = arith.addi %c0_i32_34, %64 : i32
      %c1_i32_35 = arith.constant 1 : i32
      %66:3 = scf.for %arg17 = %c0_i32_34 to %65 step %c1_i32_35 iter_args(%arg18 = %60, %arg19 = %61, %arg20 = %62) -> (vector<4x8x1xf32>, vector<4x8x1xf32>, vector<4x8x8xf32>)  : i32 {
        %c8_i32_53 = arith.constant 8 : i32
        %107 = arith.muli %arg17, %c8_i32_53 : i32
        %108 = tpu.assume_multiple %107, 8 : i32
        %c0_54 = arith.constant 0 : index
        %109 = arith.index_cast %108 : i32 to index
        %c0_55 = arith.constant 0 : index
        %110 = vector.load %arg3[%c0_54, %109, %c0_55] : memref<1x8x32xf32, #tpu.memory_space<vmem>>, vector<1x8x32xf32>
        %111 = vector.shape_cast %110 : vector<1x8x32xf32> to vector<8x32xf32>
        %c0_56 = arith.constant 0 : index
        %c0_57 = arith.constant 0 : index
        %112 = vector.load %arg4[%c0_56, %c0_57] : memref<1x32xf32, #tpu.memory_space<vmem>>, vector<1x32xf32>
        %113 = vector.shape_cast %112 : vector<1x32xf32> to vector<32xf32>
        %c0_58 = arith.constant 0 : index
        %c0_59 = arith.constant 0 : index
        %114 = vector.load %arg5[%c0_58, %c0_59] : memref<1x32xf32, #tpu.memory_space<vmem>>, vector<1x32xf32>
        %115 = vector.shape_cast %114 : vector<1x32xf32> to vector<32xf32>
        %cst_60 = arith.constant dense<0.000000e+00> : vector<8xf32>
        %116 = vector.multi_reduction <add>, %111, %cst_60 [1] : vector<8x32xf32> to vector<8xf32>
        %117 = vector.shape_cast %116 : vector<8xf32> to vector<8x1xf32>
        %cst_61 = arith.constant 3.200000e+01 : f32
        %118 = vector.broadcast %cst_61 : f32 to vector<8x1xf32>
        %119 = arith.divf %117, %118 : vector<8x1xf32>
        %120 = vector.broadcast %119 : vector<8x1xf32> to vector<8x32xf32>
        %121 = arith.subf %111, %120 : vector<8x32xf32>
        %122 = arith.mulf %121, %121 : vector<8x32xf32>
        %cst_62 = arith.constant dense<0.000000e+00> : vector<8xf32>
        %123 = vector.multi_reduction <add>, %122, %cst_62 [1] : vector<8x32xf32> to vector<8xf32>
        %124 = vector.shape_cast %123 : vector<8xf32> to vector<8x1xf32>
        %cst_63 = arith.constant 3.200000e+01 : f32
        %125 = vector.broadcast %cst_63 : f32 to vector<8x1xf32>
        %126 = arith.divf %124, %125 : vector<8x1xf32>
        %127 = vector.broadcast %119 : vector<8x1xf32> to vector<8x32xf32>
        %128 = arith.subf %111, %127 : vector<8x32xf32>
        %cst_64 = arith.constant 9.99999974E-6 : f32
        %129 = vector.broadcast %cst_64 : f32 to vector<8x1xf32>
        %130 = arith.addf %126, %129 : vector<8x1xf32>
        %131 = math.rsqrt %130 : vector<8x1xf32>
        %132 = vector.broadcast %131 : vector<8x1xf32> to vector<8x32xf32>
        %133 = arith.mulf %128, %132 : vector<8x32xf32>
        %134 = vector.shape_cast %113 : vector<32xf32> to vector<1x32xf32>
        %135 = vector.broadcast %134 : vector<1x32xf32> to vector<8x32xf32>
        %136 = arith.mulf %133, %135 : vector<8x32xf32>
        %137 = vector.shape_cast %115 : vector<32xf32> to vector<1x32xf32>
        %138 = vector.broadcast %137 : vector<1x32xf32> to vector<8x32xf32>
        %139 = arith.addf %136, %138 : vector<8x32xf32>
        %140 = arith.truncf %139 : vector<8x32xf32> to vector<8x32xbf16>
        %c0_65 = arith.constant 0 : index
        %c32 = arith.constant 32 : index
        %141 = vector.load %arg6[%c0_65, %c32] : memref<32x96xbf16, #tpu.memory_space<vmem>>, vector<32x32xbf16>
        %cst_66 = arith.constant dense<0.000000e+00> : vector<8x32xf32>
        %142 = tpu.matmul %140, %141, %cst_66 {dimension_numbers = #tpu.dot_dimension_numbers<[1], [0], [0], [1], [0, 0, 1, 1], [], []>} : vector<8x32xbf16>, vector<32x32xbf16>, vector<8x32xf32> -> vector<8x32xf32>
        %c0_67 = arith.constant 0 : index
        %c64 = arith.constant 64 : index
        %143 = vector.load %arg6[%c0_67, %c64] : memref<32x96xbf16, #tpu.memory_space<vmem>>, vector<32x32xbf16>
        %cst_68 = arith.constant dense<0.000000e+00> : vector<8x32xf32>
        %144 = tpu.matmul %140, %143, %cst_68 {dimension_numbers = #tpu.dot_dimension_numbers<[1], [0], [0], [1], [0, 0, 1, 1], [], []>} : vector<8x32xbf16>, vector<32x32xbf16>, vector<8x32xf32> -> vector<8x32xf32>
        %145 = vector.shape_cast %142 : vector<8x32xf32> to vector<8x4x8xf32>
        %146 = arith.truncf %145 : vector<8x4x8xf32> to vector<8x4x8xbf16>
        %147 = vector.shape_cast %144 : vector<8x32xf32> to vector<8x4x8xf32>
        %148 = arith.truncf %147 : vector<8x4x8xf32> to vector<8x4x8xbf16>
        "tpu.trace_start"() <{level = 10 : i32, message = "qnd,knd->nqk"}> : () -> ()
        %cst_69 = arith.constant dense<0.000000e+00> : vector<4x8x8xf32>
        %149 = tpu.matmul %59, %146, %cst_69 {dimension_numbers = #tpu.dot_dimension_numbers<[2], [2], [0], [0], [0, 1, 0, 0, 1, 0], [1], [1]>} : vector<8x4x8xbf16>, vector<8x4x8xbf16>, vector<4x8x8xf32> -> vector<4x8x8xf32>
        "tpu.trace_stop"() : () -> ()
        %150 = tpu.iota {dimensions = array<i32: 0>} : vector<8x8xi32>
        %151 = vector.broadcast %21 : i32 to vector<8x8xi32>
        %152 = arith.addi %151, %150 : vector<8x8xi32>
        %153 = tpu.iota {dimensions = array<i32: 1>} : vector<8x8xi32>
        %154 = vector.broadcast %108 : i32 to vector<8x8xi32>
        %155 = arith.addi %154, %153 : vector<8x8xi32>
        %156 = arith.cmpi sge, %152, %155 : vector<8x8xi32>
        %157 = vector.shape_cast %156 : vector<8x8xi1> to vector<1x8x8xi1>
        %cst_70 = arith.constant -1.000000e+30 : f32
        %158 = vector.shape_cast %157 : vector<1x8x8xi1> to vector<1x8x8xi1>
        %159 = vector.broadcast %158 : vector<1x8x8xi1> to vector<4x8x8xi1>
        %160 = vector.broadcast %cst_70 : f32 to vector<4x8x8xf32>
        %161 = arith.select %159, %149, %160 : vector<4x8x8xi1>, vector<4x8x8xf32>
        %cst_71 = arith.constant dense<0xFF800000> : vector<4x8xf32>
        %162 = vector.multi_reduction <maximumf>, %161, %cst_71 [2] : vector<4x8x8xf32> to vector<4x8xf32>
        %163 = vector.shape_cast %162 : vector<4x8xf32> to vector<4x8x1xf32>
        %164 = arith.maximumf %arg18, %163 : vector<4x8x1xf32>
        %165 = arith.subf %arg18, %164 : vector<4x8x1xf32>
        %166 = math.exp %165 : vector<4x8x1xf32>
        %167 = vector.broadcast %164 : vector<4x8x1xf32> to vector<4x8x8xf32>
        %168 = arith.subf %161, %167 : vector<4x8x8xf32>
        %169 = math.exp %168 : vector<4x8x8xf32>
        %170 = arith.mulf %166, %arg19 : vector<4x8x1xf32>
        %cst_72 = arith.constant dense<0.000000e+00> : vector<4x8xf32>
        %171 = vector.multi_reduction <add>, %169, %cst_72 [2] : vector<4x8x8xf32> to vector<4x8xf32>
        %172 = vector.shape_cast %171 : vector<4x8xf32> to vector<4x8x1xf32>
        %173 = arith.addf %170, %172 : vector<4x8x1xf32>
        %174 = vector.broadcast %166 : vector<4x8x1xf32> to vector<4x8x8xf32>
        %175 = arith.mulf %174, %arg20 : vector<4x8x8xf32>
        %176 = arith.truncf %169 : vector<4x8x8xf32> to vector<4x8x8xbf16>
        "tpu.trace_start"() <{level = 10 : i32, message = "nqk,knd->nqd"}> : () -> ()
        %cst_73 = arith.constant dense<0.000000e+00> : vector<4x8x8xf32>
        %177 = tpu.matmul %176, %148, %cst_73 {dimension_numbers = #tpu.dot_dimension_numbers<[2], [0], [1], [2], [0, 0, 0, 1, 1, 2], [0], [1]>} : vector<4x8x8xbf16>, vector<8x4x8xbf16>, vector<4x8x8xf32> -> vector<4x8x8xf32>
        "tpu.trace_stop"() : () -> ()
        %178 = arith.addf %175, %177 : vector<4x8x8xf32>
        scf.yield %164, %173, %178 : vector<4x8x1xf32>, vector<4x8x1xf32>, vector<4x8x8xf32>
      }
      %cst_36 = arith.constant 1.000000e+00 : f32
      %67 = vector.broadcast %cst_36 : f32 to vector<4x8x1xf32>
      %68 = arith.divf %67, %66#1 : vector<4x8x1xf32>
      %69 = vector.broadcast %68 : vector<4x8x1xf32> to vector<4x8x8xf32>
      %70 = arith.mulf %66#2, %69 : vector<4x8x8xf32>
      %71 = tpu.transpose %70, [1, 0, 2] : vector<4x8x8xf32> -> vector<8x4x8xf32>
      %72 = vector.shape_cast %71 : vector<8x4x8xf32> to vector<8x32xf32>
      %73 = arith.addf %24, %72 : vector<8x32xf32>
      %c0_37 = arith.constant 0 : index
      %c0_38 = arith.constant 0 : index
      %74 = vector.load %arg14[%c0_37, %c0_38] : memref<8x32xf32, #tpu.memory_space<vmem>>, vector<8x32xf32>
      tpu.vector_store %arg14[%c0_37, %c0_38], %73 {strides = array<i32>} : memref<8x32xf32, #tpu.memory_space<vmem>>, vector<8x32xf32>,
      %c0_39 = arith.constant 0 : index
      %c0_40 = arith.constant 0 : index
      %75 = vector.load %arg7[%c0_39, %c0_40] : memref<1x32xf32, #tpu.memory_space<vmem>>, vector<1x32xf32>
      %76 = vector.shape_cast %75 : vector<1x32xf32> to vector<32xf32>
      %c0_41 = arith.constant 0 : index
      %c0_42 = arith.constant 0 : index
      %77 = vector.load %arg8[%c0_41, %c0_42] : memref<1x32xf32, #tpu.memory_space<vmem>>, vector<1x32xf32>
      %78 = vector.shape_cast %77 : vector<1x32xf32> to vector<32xf32>
      %cst_43 = arith.constant dense<0.000000e+00> : vector<8xf32>
      %79 = vector.multi_reduction <add>, %73, %cst_43 [1] : vector<8x32xf32> to vector<8xf32>
      %80 = vector.shape_cast %79 : vector<8xf32> to vector<8x1xf32>
      %cst_44 = arith.constant 3.200000e+01 : f32
      %81 = vector.broadcast %cst_44 : f32 to vector<8x1xf32>
      %82 = arith.divf %80, %81 : vector<8x1xf32>
      %83 = vector.broadcast %82 : vector<8x1xf32> to vector<8x32xf32>
      %84 = arith.subf %73, %83 : vector<8x32xf32>
      %85 = arith.mulf %84, %84 : vector<8x32xf32>
      %cst_45 = arith.constant dense<0.000000e+00> : vector<8xf32>
      %86 = vector.multi_reduction <add>, %85, %cst_45 [1] : vector<8x32xf32> to vector<8xf32>
      %87 = vector.shape_cast %86 : vector<8xf32> to vector<8x1xf32>
      %cst_46 = arith.constant 3.200000e+01 : f32
      %88 = vector.broadcast %cst_46 : f32 to vector<8x1xf32>
      %89 = arith.divf %87, %88 : vector<8x1xf32>
      %90 = vector.broadcast %82 : vector<8x1xf32> to vector<8x32xf32>
      %91 = arith.subf %73, %90 : vector<8x32xf32>
      %cst_47 = arith.constant 9.99999974E-6 : f32
      %92 = vector.broadcast %cst_47 : f32 to vector<8x1xf32>
      %93 = arith.addf %89, %92 : vector<8x1xf32>
      %94 = math.rsqrt %93 : vector<8x1xf32>
      %95 = vector.broadcast %94 : vector<8x1xf32> to vector<8x32xf32>
      %96 = arith.mulf %91, %95 : vector<8x32xf32>
      %97 = vector.shape_cast %76 : vector<32xf32> to vector<1x32xf32>
      %98 = vector.broadcast %97 : vector<1x32xf32> to vector<8x32xf32>
      %99 = arith.mulf %96, %98 : vector<8x32xf32>
      %100 = vector.shape_cast %78 : vector<32xf32> to vector<1x32xf32>
      %101 = vector.broadcast %100 : vector<1x32xf32> to vector<8x32xf32>
      %102 = arith.addf %99, %101 : vector<8x32xf32>
      %103 = arith.truncf %102 : vector<8x32xf32> to vector<8x32xbf16>
      %c0_48 = arith.constant 0 : index
      %c0_49 = arith.constant 0 : index
      %104 = vector.load %arg15[%c0_48, %c0_49] : memref<8x32xbf16, #tpu.memory_space<vmem>>, vector<8x32xbf16>
      tpu.vector_store %arg15[%c0_48, %c0_49], %103 {strides = array<i32>} : memref<8x32xbf16, #tpu.memory_space<vmem>>, vector<8x32xbf16>,
      %cst_50 = arith.constant 0.000000e+00 : f32
      %105 = vector.broadcast %cst_50 : f32 to vector<8x32xf32>
      %c0_51 = arith.constant 0 : index
      %c0_52 = arith.constant 0 : index
      %106 = vector.load %arg16[%c0_51, %c0_52] : memref<8x32xf32, #tpu.memory_space<vmem>>, vector<8x32xf32>
      tpu.vector_store %arg16[%c0_51, %c0_52], %105 {strides = array<i32>} : memref<8x32xf32, #tpu.memory_space<vmem>>, vector<8x32xf32>,
    } else {
    }
    %c0 = arith.constant 0 : index
    %c0_1 = arith.constant 0 : index
    %3 = vector.load %arg15[%c0, %c0_1] : memref<8x32xbf16, #tpu.memory_space<vmem>>, vector<8x32xbf16>
    %c0_2 = arith.constant 0 : index
    %c0_3 = arith.constant 0 : index
    %4 = vector.load %arg9[%c0_2, %c0_3] : memref<32x128xbf16, #tpu.memory_space<vmem>>, vector<32x128xbf16>
    %cst = arith.constant dense<0.000000e+00> : vector<8x128xf32>
    %5 = tpu.matmul %3, %4, %cst {dimension_numbers = #tpu.dot_dimension_numbers<[1], [0], [0], [1], [0, 0, 1, 1], [], []>} : vector<8x32xbf16>, vector<32x128xbf16>, vector<8x128xf32> -> vector<8x128xf32>
    %c0_4 = arith.constant 0 : index
    %c0_5 = arith.constant 0 : index
    %6 = vector.load %arg10[%c0_4, %c0_5] : memref<1x128xf32, #tpu.memory_space<vmem>>, vector<1x128xf32>
    %7 = vector.broadcast %6 : vector<1x128xf32> to vector<8x128xf32>
    %8 = arith.addf %5, %7 : vector<8x128xf32>
    %cst_6 = arith.constant 0.000000e+00 : f32
    %9 = vector.broadcast %cst_6 : f32 to vector<8x128xf32>
    %10 = arith.maximumf %8, %9 : vector<8x128xf32>
    %c0_7 = arith.constant 0 : index
    %c0_8 = arith.constant 0 : index
    %11 = vector.load %arg16[%c0_7, %c0_8] : memref<8x32xf32, #tpu.memory_space<vmem>>, vector<8x32xf32>
    %12 = arith.truncf %10 : vector<8x128xf32> to vector<8x128xbf16>
    %c0_9 = arith.constant 0 : index
    %c0_10 = arith.constant 0 : index
    %13 = vector.load %arg11[%c0_9, %c0_10] : memref<128x32xbf16, #tpu.memory_space<vmem>>, vector<128x32xbf16>
    %cst_11 = arith.constant dense<0.000000e+00> : vector<8x32xf32>
    %14 = tpu.matmul %12, %13, %cst_11 {dimension_numbers = #tpu.dot_dimension_numbers<[1], [0], [0], [1], [0, 0, 1, 1], [], []>} : vector<8x128xbf16>, vector<128x32xbf16>, vector<8x32xf32> -> vector<8x32xf32>
    %15 = arith.addf %11, %14 : vector<8x32xf32>
    %c0_12 = arith.constant 0 : index
    %c0_13 = arith.constant 0 : index
    %16 = vector.load %arg16[%c0_12, %c0_13] : memref<8x32xf32, #tpu.memory_space<vmem>>, vector<8x32xf32>
    tpu.vector_store %arg16[%c0_12, %c0_13], %15 {strides = array<i32>} : memref<8x32xf32, #tpu.memory_space<vmem>>, vector<8x32xf32>,
    %c0_i32_14 = arith.constant 0 : i32
    %17 = arith.cmpi eq, %arg2, %c0_i32_14 : i32
    %18 = arith.extui %17 : i1 to i32
    %c0_i32_15 = arith.constant 0 : i32
    %19 = arith.cmpi ne, %18, %c0_i32_15 : i32
    scf.if %19 {
      %c0_16 = arith.constant 0 : index
      %c0_17 = arith.constant 0 : index
      %20 = vector.load %arg14[%c0_16, %c0_17] : memref<8x32xf32, #tpu.memory_space<vmem>>, vector<8x32xf32>
      %c0_18 = arith.constant 0 : index
      %c0_19 = arith.constant 0 : index
      %21 = vector.load %arg16[%c0_18, %c0_19] : memref<8x32xf32, #tpu.memory_space<vmem>>, vector<8x32xf32>
      %22 = arith.addf %20, %21 : vector<8x32xf32>
      %c0_20 = arith.constant 0 : index
      %c0_21 = arith.constant 0 : index
      %23 = vector.load %arg12[%c0_20, %c0_21] : memref<1x32xf32, #tpu.memory_space<vmem>>, vector<1x32xf32>
      %24 = vector.broadcast %23 : vector<1x32xf32> to vector<8x32xf32>
      %25 = arith.addf %22, %24 : vector<8x32xf32>
      %c0_22 = arith.constant 0 : index
      %c0_23 = arith.constant 0 : index
      %c0_24 = arith.constant 0 : index
      %26 = vector.load %arg13[%c0_22, %c0_23, %c0_24] : memref<1x8x32xf32, #tpu.memory_space<vmem>>, vector<1x8x32xf32>
      %27 = vector.shape_cast %26 : vector<1x8x32xf32> to vector<8x32xf32>
      %28 = vector.shape_cast %25 : vector<8x32xf32> to vector<1x8x32xf32>
      tpu.vector_store %arg13[%c0_22, %c0_23, %c0_24], %28 {strides = array<i32>} : memref<1x8x32xf32, #tpu.memory_space<vmem>>, vector<1x8x32xf32>,
    } else {
    }
    return
  }
  func.func @transform_0(%arg0: i32, %arg1: i32, %arg2: i32) -> (i32, i32, i32) {
    %c0_i32 = arith.constant 0 : i32
    %c0_i32_0 = arith.constant 0 : i32
    %c0_i32_1 = arith.constant 0 : i32
    return %arg0, %c0_i32, %c0_i32_0 : i32, i32, i32
  }
  func.func @transform_1(%arg0: i32, %arg1: i32, %arg2: i32) -> (i32, i32) {
    %c0_i32 = arith.constant 0 : i32
    %c0_i32_0 = arith.constant 0 : i32
    %c0_i32_1 = arith.constant 0 : i32
    return %c0_i32, %c0_i32_0 : i32, i32
  }
  func.func @transform_2(%arg0: i32, %arg1: i32, %arg2: i32) -> (i32, i32) {
    %c0_i32 = arith.constant 0 : i32
    %c0_i32_0 = arith.constant 0 : i32
    %c0_i32_1 = arith.constant 0 : i32
    return %c0_i32, %c0_i32_0 : i32, i32
  }
  func.func @transform_3(%arg0: i32, %arg1: i32, %arg2: i32) -> (i32, i32) {
    %c0_i32 = arith.constant 0 : i32
    %c0_i32_0 = arith.constant 0 : i32
    %c0_i32_1 = arith.constant 0 : i32
    return %c0_i32, %c0_i32_0 : i32, i32
  }
  func.func @transform_4(%arg0: i32, %arg1: i32, %arg2: i32) -> (i32, i32) {
    %c0_i32 = arith.constant 0 : i32
    %c0_i32_0 = arith.constant 0 : i32
    %c0_i32_1 = arith.constant 0 : i32
    return %c0_i32, %c0_i32_0 : i32, i32
  }
  func.func @transform_5(%arg0: i32, %arg1: i32, %arg2: i32) -> (i32, i32) {
    %c0_i32 = arith.constant 0 : i32
    %c0_i32_0 = arith.constant 0 : i32
    %c0_i32_1 = arith.constant 0 : i32
    return %c0_i32, %c0_i32_0 : i32, i32
  }
  func.func @transform_6(%arg0: i32, %arg1: i32, %arg2: i32) -> (i32, i32) {
    %c0_i32 = arith.constant 0 : i32
    %c0_i32_0 = arith.constant 0 : i32
    return %c0_i32, %arg2 : i32, i32
  }
  func.func @transform_7(%arg0: i32, %arg1: i32, %arg2: i32) -> (i32, i32) {
    %c0_i32 = arith.constant 0 : i32
    %c0_i32_0 = arith.constant 0 : i32
    return %c0_i32, %arg2 : i32, i32
  }
  func.func @transform_8(%arg0: i32, %arg1: i32, %arg2: i32) -> (i32, i32) {
    %c0_i32 = arith.constant 0 : i32
    %c0_i32_0 = arith.constant 0 : i32
    return %arg2, %c0_i32 : i32, i32
  }
  func.func @transform_9(%arg0: i32, %arg1: i32, %arg2: i32) -> (i32, i32) {
    %c0_i32 = arith.constant 0 : i32
    %c0_i32_0 = arith.constant 0 : i32
    %c0_i32_1 = arith.constant 0 : i32
    return %c0_i32, %c0_i32_0 : i32, i32
  }
  func.func @transform_10(%arg0: i32, %arg1: i32, %arg2: i32) -> (i32, i32, i32) {
    %c0_i32 = arith.constant 0 : i32
    %c0_i32_0 = arith.constant 0 : i32
    return %arg0, %arg1, %c0_i32 : i32, i32, i32
  }
}

</mosaic_0001>

<bundles_post_ra>
// kernel: tpu_custom_call.1
= control target key start
LH: loop header
LB: loop body
LE: loop exit
PB: predicated region body
PF: predicated region fallthrough
CT: control target
= control target key end

     0   :  { %s3782_s0 = inlined_call_operand.vmem [shape: f32[2,8,32], index: 0, kind: input, shape index: {}]   ;;  %s3783_s1 = inlined_call_operand.vmem [shape: f32[1,32], index: 1, kind: input, shape index: {}]   ;;  %s3784_s2 = inlined_call_operand.vmem [shape: f32[1,32], index: 2, kind: input, shape index: {}]   ;;  %s3785_s3 = inlined_call_operand.vmem [shape: bf16[32,96], index: 3, kind: input, shape index: {}]   ;;  %s3786_s4 = inlined_call_operand.vmem [shape: f32[1,32], index: 4, kind: input, shape index: {}]   ;;  %s3787_s5 = inlined_call_operand.vmem [shape: f32[1,32], index: 5, kind: input, shape index: {}]   ;;  %s3788_s6 = inlined_call_operand.vmem [shape: bf16[32,128], index: 6, kind: input, shape index: {}]   ;;  %s3789_s7 = inlined_call_operand.vmem [shape: f32[1,128], index: 7, kind: input, shape index: {}]   ;;  %s3790_s8 = inlined_call_operand.vmem [shape: bf16[128,32], index: 8, kind: input, shape index: {}]   ;;  %s3791_s9 = inlined_call_operand.vmem [shape: f32[1,32], index: 9, kind: input, shape index: {}]   ;;  %s3792_s10 = inlined_call_operand.hbm [shape: f32[2,8,32], index: 10, kind: output, shape index: {}]  }
   0x1   :  { %3794 = sst [smem:[#allocation8_spill]] %s3782_s0 }
   0x2   :  { %15 = vsyncpa [#allocation6], 0 }
   0x3   :  { %17 = vsyncpa [#allocation6 + $0x1], 0  ;;  %s3188_s13 = smov 0   ;;  %s3190_s14 = smov 0  }
   0x4   :  { %s3192_s15 = smov 0   ;;  %s3194_s16 = smov 0  }
   0x5   :  { %s3196_s17 = smov 0   ;;  %s3198_s18 = smov 0  }
   0x6 LB: > { %s2513_s19 = sadd.s32 4294967295, %s3060_s18   ;;  %s2514_s20 = sadd.s32 4294967294, %s3060_s18   ;;  %s3060_s18 = sphi %s3198_s18, %s23_s18   ;;  %s3056_s17 = sphi %s3196_s17, %s3818_s17   ;;  %s3052_s16 = sphi %s3194_s16, %s3817_s16   ;;  %s3048_s15 = sphi %s3192_s15, %s3816_s15   ;;  %s3044_s14 = sphi %s3190_s14, %s3815_s14   ;;  %s3040_s13 = sphi %s3188_s13, %s3814_s13  }
   0x7   : > { %s42_s21 = sadd.s32 1, %s3056_s17  ;;  %s281_s22 = sadd.s32 1, %s3048_s15 }
   0x8   : > { %p44_p0 = scmp.ge.s32.totalorder %s42_s21, 2  ;;  %p291_p1 = scmp.ne.s32.totalorder %s3048_s15, %s3044_s14 }
   0x9   : > { %p292_p2 = scmp.eq.s32.totalorder %s2513_s19, 1  ;;  %p297_p3 = scmp.ne.s32.totalorder %s3044_s14, %s3040_s13 }
   0xa   : > { %s3820_s21 = smov (%p44_p0, %s42_s21), 0  ;;  %p298_p5 = scmp.eq.s32.totalorder %s2514_s20, 1 }
   0xb   : > { %p3228_p4 = por %p292_p2, %p291_p1  ;;  %s276_s24 = ssub.s32 %s3056_s17, %s3820_s21 }
   0xc   : > { %p2520_p6 = scmp.ge.s32.totalorder %s3060_s18, 1  ;;  %p279_p7 = scmp.eq.s32.totalorder %s276_s24, 0 }
   0xd   : > { %p3235_p8 = por %p298_p5, %p297_p3  ;;  %p363_p9 = scmp.lt.s32.totalorder %s3060_s18, 3 }
   0xe   : > { %s3241_s26 = scalar_select %p279_p7, %s3048_s15, %s281_s22  }
   0xf   : > { %p364_p10 = pnand %p2520_p6, %p363_p9 }
  0x10   : > { %p412_p11 = scmp.lt.s32.totalorder (!%p364_p10), %s3052_s16, 1  ;;  %vm439_vm0 = vcmask (!%p364_p10), 261120   ;;  %s3797_s0 = sld [smem:[#allocation8_spill]] (!%p364_p10)  ;;  %v2886_v7 = vld [vmem:[%s3785_s3] sm:$0xff] (!%p364_p10)   ;;  %v3114_v8 = vmov (!%p364_p10), 0.0   ;;  %vm3115_vm1 = vmmov (!%p364_p10), 0   ;;  %v544_v27 = vlaneseq (!%p364_p10) }
  0x11   : > { %367 = sbr.rel (%p364_p10) target bundleno = 3173 (0xc65), region = 60  ;;  %s3793_s12 = sand.u32 (!%p364_p10), 1, %s3044_s14   ;;  %2609 = vmatprep.subr.bf16.mxu0 (!%p364_p10), %v3114_v8  ;;  %2613 = vmatprep.mubr.msk.bf16.mxu0 (!%p364_p10), %vm3115_vm1, %v3114_v8  ;;  %v2887_v9 = vld [vmem:[%s3785_s3 + $0x8] sm:$0xff] (!%p364_p10)   ;;  %v2523_v14 = vld [vmem:[%s3783_s1] ss:$0 sm:$0xff] (!%p364_p10)  ;;  %v3321_v58 = vmov (!%p364_p10), 0.0  }
  0x12   : > { %s3263_s22 = sshll.u32 (!%p364_p10), %s3793_s12, 3  ;;  %2610 = vmatpush3.bf16.msra.mxu0 (!%p364_p10), %v2886_v7  ;;  %v2524_v16 = vld [vmem:[%s3784_s2] ss:$0 sm:$0xff] (!%p364_p10)  ;;  %s3116_s20 = smov (!%p364_p10), 104   ;;  %v3119_v25 = vmov (!%p364_p10), 1983009808  }
  0x13   : > { %2611 = vmatprep.subr.bf16.mxu0 (!%p364_p10), %v3114_v8  ;;  %s3117_s24 = smov (!%p364_p10), 120   ;;  %v542_v26 = vunpack.c.l.s4 (!%p364_p10), %v3119_v25  ;;  %v3120_v28 = vmov (!%p364_p10), 1934713408   ;;  %v3280_v31 = vshrl.u32 (!%p364_p10), %v544_v27, 7  ;;  %v3323_v59 = vmov (!%p364_p10), 0.0   ;;  %s3345_s29 = smov (!%p364_p10), 0  }
  0x14   : > { %v574_v29 = vunpack.c.l.s4 (!%p364_p10), %v3120_v28  ;;  %v3325_v60 = vmov (!%p364_p10), 0.0   ;;  %v3327_v61 = vmov (!%p364_p10), 0.0   ;;  %v3329_v62 = vmov (!%p364_p10), 0.0  }
  0x15   : > { %v543_v30 = vunpack.c.0.s8 (!%p364_p10), %v542_v26  ;;  %v3331_v63 = vmov (!%p364_p10), 0.0  }
  0x16   : > { %2612 = vmatpush3.bf16.msra.mxu0 (!%p364_p10), %v2887_v9  ;;  %v575_v34 = vunpack.c.0.s8 (!%p364_p10), %v574_v29 }
  0x17   : > { %v3283_v35 = vsub.s32 (!%p364_p10), %v543_v30, %v3280_v31 }
  0x18   : > { %s413_s27 = scalar_select %p412_p11, %s3052_s16, 1  ;;  %v3286_v41 = vsub.s32 %v575_v34, %v3280_v31 }
  0x1a   : > { %s2522_s28 = sshll.u32 %s413_s27, 3  ;;  %s3118_s27 = smov 112  }
  0x1b   : > { %s3248_s11 = scalar_lea.vmem %s3797_s0, %s2522_s28 }
  0x1c   : > { %v3251_v0 = vld [vmem:[%s3248_s11] sm:$0xff] }
  0x1d   : > { %v440_v1 = vsel %vm439_vm0, %v3251_v0, 0.0 }
  0x1e   : > { %441 = vadd.xlane.f32.xlu0 %v440_v1  ;;  %v3333_v1 = vmov 0.0  }
  0xab   : > { %v442_v2 = vpop.xlane.xlu0 %441 }
  0xac   : > { %v444_v3 = vmul.f32 0.03125, %v442_v2  ;;  %v3335_v2 = vmov 0.0  }
  0xae   : > { %v445_v4 = vsub.f32 %v3251_v0, %v444_v3  ;;  %v3337_v3 = vmov -1e+30  }
  0xb0   : > { %v446_v5 = vmul.f32 %v445_v4, %v445_v4 }
  0xb2   : > { %v447_v6 = vsel %vm439_vm0, %v446_v5, 0.0  ;;  %v3341_v5 = vmov -1e+30  }
  0xb3   : > { %448 = vadd.xlane.f32.xlu0 %v447_v6  ;;  %v3343_v6 = vmov -1e+30  }
 0x140   : > { %v449_v10 = vpop.xlane.xlu0 %448 }
 0x141   : > { %v450_v11 = vmul.f32 0.03125, %v449_v10 }
 0x143   : > { %v451_v12 = vadd.f32 1e-05, %v450_v11 }
 0x145   : > { %2888 = vrsqrt.f32 %v451_v12 }
 0x14f   : > { %v2889_v13 = vpop.eup %2888 }
 0x150   : > { %v453_v15 = vmul.f32 %v2889_v13, %v445_v4  ;;  %v3339_v4 = vmov -1e+30  }
 0x152   : > { %v460_v17 = vmul.f32 %v2523_v14, %v453_v15 }
 0x154   : > { %v467_v18 = vadd.f32 %v2524_v16, %v460_v17 }
 0x156   : > { %v468_v19 = vpack.c.bf16 %v467_v18, %v467_v18 }
 0x158   : > { %2614 = vmatmul.mubr.msk.bf16.vlgmr.msra.gmra.mrb[0].mxu0 %vm439_vm0, %v468_v19 }
 0x22b   : > { %v522_v20 = vpop.f32.mrb[0].mxu0 }
 0x22c   : > { %v528_v21 = vmul.f32 0.17677669, %v522_v20  ;;  %v2615_v22 = vpop.f32.mrb[1].mxu0 }
 0x22d   : > { %v525_v23 = vpop.f32.mrb[2].mxu0 }
 0x22e   : > { %536 = vrot.lane.b32.xlu0 %v528_v21, %s3116_s20  ;;  %530 = vrot.lane.b32.xlu1 %v528_v21, %s3117_s24  ;;  %v2616_v24 = vpop.f32.mrb[3].mxu0 }
 0x232   : > { %533 = vrot.lane.b32.xlu1 %v528_v21, %s3118_s27 }
 0x2a0   : > { %v537_v32 = vpop.permute.xlu0 %536  ;;  %v531_v33 = vpop.permute.xlu1 %530 }
 0x2a1   : > { %v555_v36 = vcombine.low %v531_v33, %v537_v32  ;;  %v556_v37 = vcombine.high %v531_v33, %v537_v32 }
 0x2a3   : > { %v563_v42 = vrot.slane %v555_v36, %v3283_v35  ;;  %v570_v43 = vrot.slane %v556_v37, %v3283_v35 }
 0x2a4   : > { %v534_v38 = vpop.permute.xlu1 %533 }
 0x2a5   : > { %v539_v39 = vcombine.low %v528_v21, %v534_v38  ;;  %v540_v40 = vcombine.high %v528_v21, %v534_v38 }
 0x2a7   : > { %v547_v44 = vrot.slane %v539_v39, %v3283_v35  ;;  %v554_v45 = vrot.slane %v540_v40, %v3283_v35 }
 0x2a9   : > { %v571_v46 = vcombine.low %v547_v44, %v563_v42  ;;  %v572_v47 = vcombine.high %v547_v44, %v563_v42  ;;  %v587_v48 = vcombine.low %v554_v45, %v570_v43  ;;  %v588_v49 = vcombine.high %v554_v45, %v570_v43 }
 0x2ab   : > { %v3293_v50 = vrot.slane %v571_v46, %v3286_v41  ;;  %v3296_v51 = vrot.slane %v572_v47, %v3286_v41  ;;  %v3299_v52 = vrot.slane %v587_v48, %v3286_v41  ;;  %v3302_v53 = vrot.slane %v588_v49, %v3286_v41 }
 0x2ad   : > { %v3306_v54 = vcombine.high %v3293_v50, %v3114_v8  ;;  %v3310_v55 = vcombine.high %v3296_v51, %v3114_v8  ;;  %v3314_v56 = vcombine.high %v3299_v52, %v3114_v8  ;;  %v3318_v57 = vcombine.high %v3302_v53, %v3114_v8 }
 0x2ae LB: >> { %s2528_s30 = sshll.u32 %s3112_s29, 3  ;;  %v3394_v10 = vld [vmem:[%s3785_s3] sm:$0xff]   ;;  %s3121_s27 = smov 96   ;;  %v3400_v11 = vld [vmem:[%s3785_s3 + $0x8] sm:$0xff]   ;;  %v3122_v18 = vmov 0.0   ;;  %vm3123_vm2 = vmmov 0   ;;  %s3112_s29 = sphi %s3345_s29, %s619_s29   ;;  %v3108_v6 = vphi %v3343_v6, %v3810_v6   ;;  %v3104_v5 = vphi %v3341_v5, %v3809_v5   ;;  %v3100_v4 = vphi %v3339_v4, %v3808_v4   ;;  %v3096_v3 = vphi %v3337_v3, %v3807_v3   ;;  %v3092_v2 = vphi %v3335_v2, %v3806_v2   ;;  %v3088_v1 = vphi %v3333_v1, %v3805_v1   ;;  %v3084_v63 = vphi %v3331_v63, %v3804_v63   ;;  %v3080_v62 = vphi %v3329_v62, %v3803_v62   ;;  %v3076_v61 = vphi %v3327_v61, %v3802_v61   ;;  %v3072_v60 = vphi %v3325_v60, %v3801_v60   ;;  %v3068_v59 = vphi %v3323_v59, %v3800_v59   ;;  %v3064_v58 = vphi %v3321_v58, %v3799_v58  }
 0x2af   : >> { %s635_s19 = scalar_lea.vmem %s3248_s11, %s2528_s30  ;;  %681 = vrot.lane.b32.xlu1 %v3394_v10, %s3121_s27  ;;  %2617 = vmatprep.subr.bf16.mxu0 %v3122_v18  ;;  %v2529_v24 = vld [vmem:[%s3783_s1] ss:$0 sm:$0xff]  ;;  %s3124_s24 = smov 112   ;;  %vm1432_vm3 = vcmask 1043456   ;;  %vm1428_vm4 = vcmask 64512  }
 0x2b0   : >> { %v636_v7 = vld [vmem:[%s635_s19] sm:$0xff]  ;;  %2621 = vmatprep.mubr.msk.bf16.mxu0 %vm3123_vm2, %v3122_v18  ;;  %2625 = vmatprep.subr.bf16.mxu1 %v3122_v18  ;;  %s3126_s12 = smov 104   ;;  %s3127_s28 = smov 64  }
 0x2b1   : >> { %v639_v9 = vsel %vm439_vm0, %v636_v7, 0.0  ;;  %2629 = vmatprep.mubr.msk.bf16.mxu1 %vm3123_vm2, %v3122_v18  ;;  %v2530_v26 = vld [vmem:[%s3784_s2] ss:$0 sm:$0xff]  ;;  %s619_s29 = sadd.s32 1, %s3112_s29  }
 0x2b2   : >> { %640 = vadd.xlane.f32.xlu0 %v639_v9  ;;  %p3607_p12 = scmp.ge.s32.totalorder %s619_s29, 1 }
 0x2b3   : >> { %683 = vrot.lane.b32.xlu1 %v3400_v11, %s3121_s27  ;;  %s3125_s27 = smov 120   ;;  %2147 = vst.msk [vmem:[#allocation4] sm:$0xff] (%p3607_p12), %vm439_vm0, %v3114_v8  ;;  %s3129_s11 = smov (%p3607_p12), 8   ;;  %vm2109_vm6 = vcmask (%p3607_p12), 130048   ;;  %vm2111_vm7 = vcmask (%p3607_p12), 195584   ;;  %vm2145_vm8 = vcmask (%p3607_p12), 257024  }
 0x2b4   : > { %s3130_s29 = smov (%p3607_p12), 24   ;;  %s3131_s19 = smov (%p3607_p12), 16  }
 0x321   : >> { %v682_v17 = vpop.permute.xlu1 %681 }
 0x322   : >> { %2618 = vmatpush3.bf16.msra.mxu0 %v682_v17 }
 0x323   : >> { %2619 = vmatprep.subr.bf16.mxu0 %v3122_v18 }
 0x325   : >> { %v684_v19 = vpop.permute.xlu1 %683 }
 0x326   : >> { %2620 = vmatpush3.bf16.msra.mxu0 %v684_v19 }
 0x327   : >> { %2633 = vmatprep.subr.bf16.mxu0 %v3122_v18 }
 0x33f   : >> { %v641_v12 = vpop.xlane.xlu0 %640 }
 0x340   : >> { %v642_v13 = vmul.f32 0.03125, %v641_v12 }
 0x342   : >> { %v643_v14 = vsub.f32 %v636_v7, %v642_v13 }
 0x344   : >> { %v644_v15 = vmul.f32 %v643_v14, %v643_v14 }
 0x346   : >> { %v645_v16 = vsel %vm439_vm0, %v644_v15, 0.0 }
 0x347   : >> { %646 = vadd.xlane.f32.xlu0 %v645_v16 }
 0x3d4   : >> { %v647_v20 = vpop.xlane.xlu0 %646 }
 0x3d5   : >> { %v648_v21 = vmul.f32 0.03125, %v647_v20 }
 0x3d7   : >> { %v649_v22 = vadd.f32 1e-05, %v648_v21 }
 0x3d9   : >> { %2892 = vrsqrt.f32 %v649_v22 }
 0x3e3   : >> { %v2893_v23 = vpop.eup %2892 }
 0x3e4   : >> { %v651_v25 = vmul.f32 %v2893_v23, %v643_v14 }
 0x3e6   : >> { %v658_v28 = vmul.f32 %v2529_v24, %v651_v25 }
 0x3e8   : >> { %v665_v29 = vadd.f32 %v2530_v26, %v658_v28 }
 0x3ea   : >> { %v3418_v30 = vpack.c.bf16 %v665_v29, %v665_v29 }
 0x3ec   : >> { %2622 = vmatmul.mubr.msk.bf16.vlgmr.msra.gmra.mrb[0].mxu0 %vm439_vm0, %v3418_v30 }
 0x3ed   : >> { %2635 = vmatprep.mubr.msk.bf16.mxu0 %vm3123_vm2, %v3122_v18 }
 0x4bf   : >> { %v724_v32 = vpop.f32.mrb[0].mxu0 }
 0x4c0   : >> { %780 = vrot.lane.b32.xlu1 %v724_v32, %s3124_s24  ;;  %777 = vrot.lane.b32.xlu0 %v724_v32, %s3125_s27  ;;  %v2623_v33 = vpop.f32.mrb[1].mxu0 }
 0x4c1   : >> { %v727_v34 = vpop.f32.mrb[2].mxu0 }
 0x4c2   : >> { %v2624_v36 = vpop.f32.mrb[3].mxu0 }
 0x4c4   : >> { %783 = vrot.lane.b32.xlu1 %v724_v32, %s3126_s12 }
 0x532   : >> { %v781_v37 = vpop.permute.xlu1 %780  ;;  %v778_v40 = vpop.permute.xlu0 %777 }
 0x533   : >> { %v786_v38 = vcombine.low %v724_v32, %v781_v37  ;;  %v787_v39 = vcombine.high %v724_v32, %v781_v37 }
 0x535   : >> { %v794_v45 = vrot.slane %v786_v38, %v3283_v35  ;;  %v801_v46 = vrot.slane %v787_v39, %v3283_v35 }
 0x536   : >> { %v784_v42 = vpop.permute.xlu1 %783 }
 0x537   : >> { %v802_v43 = vcombine.low %v778_v40, %v784_v42  ;;  %v803_v44 = vcombine.high %v778_v40, %v784_v42 }
 0x539   : >> { %v810_v47 = vrot.slane %v802_v43, %v3283_v35  ;;  %v817_v48 = vrot.slane %v803_v44, %v3283_v35 }
 0x53b   : >> { %v834_v49 = vcombine.low %v801_v46, %v817_v48  ;;  %v818_v7 = vcombine.low %v794_v45, %v810_v47  ;;  %v819_v9 = vcombine.high %v794_v45, %v810_v47  ;;  %v835_v12 = vcombine.high %v801_v46, %v817_v48 }
 0x53d   : >> { %v826_v13 = vrot.slane %v818_v7, %v3286_v41  ;;  %v842_v14 = vrot.slane %v834_v49, %v3286_v41  ;;  %v833_v17 = vrot.slane %v819_v9, %v3286_v41  ;;  %v849_v21 = vrot.slane %v835_v12, %v3286_v41 }
 0x53f   : >> { %v854_v15 = vpack.c.bf16 %v826_v13, %v826_v13  ;;  %v850_v16 = vcombine.high %v826_v13, %v3122_v18  ;;  %v852_v20 = vcombine.high %v842_v14, %v3122_v18  ;;  %v856_v22 = vpack.c.bf16 %v833_v17, %v833_v17 }
 0x540   : >> { %v853_v24 = vcombine.high %v849_v21, %v3122_v18  ;;  %v858_v25 = vpack.c.bf16 %v842_v14, %v842_v14  ;;  %v851_v26 = vcombine.high %v833_v17, %v3122_v18  ;;  %v860_v32 = vpack.c.bf16 %v849_v21, %v849_v21 }
 0x541   : >> { %1010 = vxpose.xlu1.c.b16.start.end [1/1] (short) (narrow) %v854_v15, 16  ;;  %v855_v19 = vpack.c.bf16 %v850_v16, %v850_v16  ;;  %v859_v23 = vpack.c.bf16 %v852_v20, %v852_v20 }
 0x542   : >> { %v861_v28 = vpack.c.bf16 %v853_v24, %v853_v24  ;;  %v857_v29 = vpack.c.bf16 %v851_v26, %v851_v26 }
 0x543   : >> { %1026 = vxpose.xlu0.c.b16.start.end [1/1] (short) (narrow) %v855_v19, 16 }
 0x545   : >> { %1042 = vxpose.xlu1.c.b16.start.end [1/1] (short) (narrow) %v856_v22, 16 }
 0x547   : >> { %1090 = vxpose.xlu0.c.b16.start.end [1/1] (short) (narrow) %v859_v23, 16  ;;  %v3128_v23 = vmov 0  }
 0x549   : >> { %1074 = vxpose.xlu1.c.b16.start.end [1/1] (short) (narrow) %v858_v25, 16 }
 0x54b   : >> { %1122 = vxpose.xlu0.c.b16.start.end [1/1] (short) (narrow) %v861_v28, 16 }
 0x54d   : >> { %1058 = vxpose.xlu1.c.b16.start.end [1/1] (short) (narrow) %v857_v29, 16 }
 0x551   : >> { %1106 = vxpose.xlu1.c.b16.start.end [1/1] (short) (narrow) %v860_v32, 16 }
 0x554   : >> { %732 = vrot.lane.b32.xlu0 %v3400_v11, %s3127_s28 }
 0x555   : >> { %730 = vrot.lane.b32.xlu1 %v3394_v10, %s3127_s28 }
 0x5a7   : >> { %v1018_v33 = vpop.trf.xlu1 }
 0x5a9   : >> { %v1034_v34 = vpop.trf.xlu0 }
 0x5ab   : >> { %v1050_v36 = vpop.trf.xlu1 }
 0x5ad   : >> { %v1098_v37 = vpop.trf.xlu0 }
 0x5ae   : >> { %v1172_v40 = vcombine.low %v1034_v34, %v1098_v37 }
 0x5af   : >> { %v1082_v38 = vpop.trf.xlu1 }
 0x5b0   : >> { %v1138_v44 = vcombine.low %v1018_v33, %v1082_v38  ;;  %v1179_v45 = vrot.slane %v1172_v40, %v3283_v35 }
 0x5b1   : >> { %v1130_v39 = vpop.trf.xlu0 }
 0x5b2   : >> { %v1145_v11 = vrot.slane %v1138_v44, %v3283_v35 }
 0x5b3   : >> { %v1066_v42 = vpop.trf.xlu1 }
 0x5b4   : >> { %v1180_v43 = vcombine.low %v1066_v42, %v1130_v39 }
 0x5b6   : >> { %v1187_v46 = vrot.slane %v1180_v43, %v3283_v35 }
 0x5b7   : >> { %v1114_v47 = vpop.trf.xlu1 }
 0x5b8   : >> { %v1188_v48 = vcombine.low %v1179_v45, %v1187_v46  ;;  %v1146_v49 = vcombine.low %v1050_v36, %v1114_v47  ;;  %v1189_v7 = vcombine.high %v1179_v45, %v1187_v46 }
 0x5ba   : >> { %v1153_v10 = vrot.slane %v1146_v49, %v3283_v35  ;;  %v1196_v9 = vrot.slane %v1188_v48, %v3286_v41  ;;  %v1203_v16 = vrot.slane %v1189_v7, %v3286_v41  ;;  %v2537_v7 = vpack.c.bf16 %v3314_v56, %v3306_v54 }
 0x5bc   : >> { %v1154_v12 = vcombine.low %v1145_v11, %v1153_v10  ;;  %v1155_v13 = vcombine.high %v1145_v11, %v1153_v10  ;;  %v1211_v20 = vshrl.u32 %v1196_v9, 16  ;;  %v1227_v26 = vshrl.u32 %v1203_v16, 16 }
 0x5bd   : >> { %v1204_v28 = vcombine.high %v1196_v9, %v3128_v23  ;;  %v1205_v38 = vcombine.high %v1203_v16, %v3128_v23  ;;  %v2535_v11 = vpack.c.bf16 %v3299_v52, %v3293_v50  ;;  %v2536_v10 = vpack.c.bf16 %v3302_v53, %v3296_v51 }
 0x5be   : >> { %v1162_v14 = vrot.slane %v1154_v12, %v3286_v41  ;;  %v1169_v15 = vrot.slane %v1155_v13, %v3286_v41 }
 0x5bf   : >> { %v1219_v37 = vshrl.u32 %v1204_v28, 16  ;;  %v1235_v44 = vshrl.u32 %v1205_v38, 16  ;;  %v955_v13 = vrot.slane %v2535_v11, %v3283_v35 }
 0x5c0   : >> { %v1208_v17 = vpack.i.b16 %v1196_v9, %v1162_v14  ;;  %v1210_v19 = vshrl.u32 %v1162_v14, 16  ;;  %v1226_v22 = vshrl.u32 %v1169_v15, 16  ;;  %v1170_v24 = vcombine.high %v1162_v14, %v3128_v23 }
 0x5c1   : >> { %v1224_v25 = vpack.i.b16 %v1203_v16, %v1169_v15  ;;  %v1171_v33 = vcombine.high %v1169_v15, %v3128_v23  ;;  %v963_v14 = vrot.slane %v2536_v10, %v3283_v35  ;;  %v980_v15 = vrot.slane %v2537_v7, %v3283_v35 }
 0x5c2   : >> { %1238 = vxpose.xlu1.c.b16.start.end [1/1] (short) (narrow) %v1208_v17, 16  ;;  %v1212_v21 = vpack.i.b16 %v1211_v20, %v1210_v19  ;;  %v1228_v29 = vpack.i.b16 %v1227_v26, %v1226_v22  ;;  %v1218_v32 = vshrl.u32 %v1170_v24, 16  ;;  %v1216_v36 = vpack.i.b16 %v1204_v28, %v1170_v24 }
 0x5c3   : >> { %v1234_v42 = vshrl.u32 %v1171_v33, 16  ;;  %v1232_v43 = vpack.i.b16 %v1205_v38, %v1171_v33  ;;  %v964_v24 = vcombine.low %v955_v13, %v963_v14 }
 0x5c4   : >> { %1254 = vxpose.xlu0.c.b16.start.end [1/1] (short) (narrow) %v1212_v21, 16  ;;  %v1220_v40 = vpack.i.b16 %v1219_v37, %v1218_v32 }
 0x5c5   : >> { %v1236_v45 = vpack.i.b16 %v1235_v44, %v1234_v42 }
 0x5c6   : >> { %1302 = vxpose.xlu1.c.b16.start.end [1/1] (short) (narrow) %v1224_v25, 16  ;;  %v733_v39 = vpop.permute.xlu0 %732 }
 0x5c7   : >> { %v731_v34 = vpop.permute.xlu1 %730 }
 0x5c8   : >> { %2626 = vmatpush3.bf16.msra.mxu1 %v731_v34  ;;  %1318 = vxpose.xlu0.c.b16.start.end [1/1] (short) (narrow) %v1228_v29, 16 }
 0x5c9   : >> { %2627 = vmatprep.subr.bf16.mxu1 %v3122_v18 }
 0x5ca   : >> { %1270 = vxpose.xlu1.c.b16.start.end [1/1] (short) (narrow) %v1216_v36, 16  ;;  %v971_v36 = vrot.slane %v964_v24, %v3286_v41 }
 0x5cc   : >> { %1286 = vxpose.xlu0.c.b16.start.end [1/1] (short) (narrow) %v1220_v40, 16  ;;  %2628 = vmatpush3.bf16.msra.mxu1 %v733_v39 }
 0x5cd   : >> { %2639 = vmatprep.subr.bf16.mxu1 %v3122_v18 }
 0x5ce   : >> { %1334 = vxpose.xlu1.c.b16.start.end [1/1] (short) (narrow) %v1232_v43, 16  ;;  %v1001_v43 = vshrl.u32 %v971_v36, 16 }
 0x5cf   : >> { %2630 = vmatmul.mubr.msk.bf16.vlgmr.msra.gmra.mrb[0].mxu1 %vm439_vm0, %v3418_v30  ;;  %v2538_v30 = vpack.c.bf16 %v3318_v57, %v3310_v55 }
 0x5d0   : >> { %1350 = vxpose.xlu0.c.b16.start.end [1/1] (short) (narrow) %v1236_v45, 16  ;;  %2641 = vmatprep.mubr.msk.bf16.mxu1 %vm3123_vm2, %v3122_v18 }
 0x5d1   : >> { %v988_v16 = vrot.slane %v2538_v30, %v3283_v35 }
 0x5d3   : >> { %v989_v25 = vcombine.low %v980_v15, %v988_v16 }
 0x5d5   : >> { %v996_v37 = vrot.slane %v989_v25, %v3286_v41 }
 0x5d7   : >> { %v1002_v44 = vshrl.u32 %v996_v37, 16  ;;  %v997_v16 = vcombine.high %v996_v37, %v3128_v23 }
 0x5d9   : >> { %v1003_v14 = vpack.i.b16 %v1002_v44, %v1001_v43 }
 0x628   : >> { %v1246_v46 = vpop.trf.xlu1 }
 0x62a   : >> { %v1262_v47 = vpop.trf.xlu0 }
 0x62c   : >> { %v1310_v48 = vpop.trf.xlu1 }
 0x62d   : >> { %v1366_v17 = vcombine.low %v1246_v46, %v1310_v48 }
 0x62e   : >> { %v1326_v49 = vpop.trf.xlu0 }
 0x62f   : >> { %v1391_v20 = vcombine.low %v1262_v47, %v1326_v49  ;;  %v1373_v26 = vrot.slane %v1366_v17, %v3283_v35  ;;  %v1000_v49 = vpack.i.b16 %v996_v37, %v971_v36 }
 0x630   : >> { %v1278_v9 = vpop.trf.xlu1 }
 0x631   : >> { %v1398_v32 = vrot.slane %v1391_v20, %v3283_v35 }
 0x632   : >> { %v1294_v12 = vpop.trf.xlu0 }
 0x634   : >> { %v1342_v19 = vpop.trf.xlu1 }
 0x635   : >> { %v1374_v21 = vcombine.low %v1278_v9, %v1342_v19 }
 0x636   : >> { %v1358_v22 = vpop.trf.xlu0 }
 0x637   : >> { %v1381_v28 = vrot.slane %v1374_v21, %v3283_v35  ;;  %v1399_v29 = vcombine.low %v1294_v12, %v1358_v22  ;;  %v972_v12 = vcombine.high %v971_v36, %v3128_v23  ;;  %v1008_v21 = vshrl.u32 %v997_v16, 16 }
 0x639   : >> { %v1382_v33 = vcombine.low %v1373_v26, %v1381_v28  ;;  %v1406_v34 = vrot.slane %v1399_v29, %v3283_v35  ;;  %v1007_v20 = vshrl.u32 %v972_v12, 16  ;;  %v1006_v22 = vpack.i.b16 %v997_v16, %v972_v12 }
 0x63b   : >> { %v1389_v38 = vrot.slane %v1382_v33, %v3286_v41  ;;  %v1407_v39 = vcombine.low %v1398_v32, %v1406_v34  ;;  %v1009_v24 = vpack.i.b16 %v1008_v21, %v1007_v20  ;;  %v1619_v32 = vand.u32 127, %v544_v27 }
 0x63c   : >> { %v1620_v33 = vstv %s2528_s30 }
 0x63d   : >> { %v1414_v40 = vrot.slane %v1407_v39, %v3286_v41  ;;  %v1390_v42 = vcombine.high %v1389_v38, %v3128_v23  ;;  %v1419_v46 = vshrl.u32 %v1389_v38, 16  ;;  %v1621_v34 = vadd.s32 %v1620_v33, %v1619_v32 }
 0x63f   : >> { %v1418_v45 = vpack.i.b16 %v1414_v40, %v1389_v38  ;;  %v1420_v47 = vshrl.u32 %v1414_v40, 16  ;;  %v1415_v48 = vcombine.high %v1414_v40, %v3128_v23  ;;  %v1425_v11 = vshrl.u32 %v1390_v42, 16 }
 0x640   : >> { %vm1622_vm5 = vcmp.ge.s32.totalorder %v3280_v31, %v1621_v34 }
 0x641   : >> { %v1434_v10 = vsel %vm1432_vm3, %v1418_v45, 0  ;;  %v1421_v7 = vpack.i.b16 %v1420_v47, %v1419_v46  ;;  %v1424_v30 = vpack.i.b16 %v1415_v48, %v1390_v42  ;;  %v1426_v9 = vshrl.u32 %v1415_v48, 16 }
 0x642   : >> { %2634 = vmatpush3.bf16.msra.mxu0 %v1434_v10 }
 0x643   : >> { %v1480_v13 = vsel %vm1432_vm3, %v1421_v7, 0  ;;  %2645 = vmatprep.subr.bf16.mxu0 %v3122_v18  ;;  %v1427_v15 = vpack.i.b16 %v1426_v9, %v1425_v11  ;;  %v1526_v17 = vsel %vm1432_vm3, %v1424_v30, 0 }
 0x644   : >> { %2640 = vmatpush3.bf16.msra.mxu1 %v1480_v13 }
 0x645   : >> { %2636 = vmatmul.mubr.msk.bf16.vlgmr.msra.gmra.mrb[4].mxu0 %vm1428_vm4, %v1000_v49  ;;  %2651 = vmatprep.subr.bf16.mxu1 %v3122_v18  ;;  %v1572_v19 = vsel %vm1432_vm3, %v1427_v15, 0 }
 0x646   : >> { %2646 = vmatpush3.bf16.msra.mxu0 %v1526_v17  ;;  %2647 = vmatprep.mubr.msk.bf16.mxu0 %vm3123_vm2, %v3122_v18 }
 0x647   : >> { %2642 = vmatmul.mubr.msk.bf16.vlgmr.msra.gmra.mrb[4].mxu1 %vm1428_vm4, %v1003_v14  ;;  %2657 = vmatprep.subr.bf16.mxu0 %v3122_v18 }
 0x648   : >> { %2652 = vmatpush3.bf16.msra.mxu1 %v1572_v19  ;;  %2653 = vmatprep.mubr.msk.bf16.mxu1 %vm3123_vm2, %v3122_v18 }
 0x649   : >> { %2663 = vmatprep.subr.bf16.mxu1 %v3122_v18 }
 0x64d   : >> { %2648 = vmatmul.mubr.msk.bf16.vlgmr.msra.gmra.mrb[8].mxu0 %vm1428_vm4, %v1006_v22 }
 0x64e   : >> { %2659 = vmatprep.mubr.msk.bf16.mxu0 %vm3123_vm2, %v3122_v18 }
 0x64f   : >> { %2654 = vmatmul.mubr.msk.bf16.vlgmr.msra.gmra.mrb[8].mxu1 %vm1428_vm4, %v1009_v24 }
 0x650   : >> { %2665 = vmatprep.mubr.msk.bf16.mxu1 %vm3123_vm2, %v3122_v18 }
 0x6a2   : >> { %v770_v25 = vpop.f32.mrb[0].mxu1 }
 0x6a3   : >> { %863 = vrot.lane.b32.xlu1 %v770_v25, %s3125_s27  ;;  %v2631_v26 = vpop.f32.mrb[1].mxu1  ;;  %s3811_s27 = scalar_lea.vmem (%p3607_p12), [#allocation5], %s3263_s22 }
 0x6a4   : >> { %v773_v28 = vpop.f32.mrb[2].mxu1 }
 0x6a5   : >> { %v2632_v29 = vpop.f32.mrb[3].mxu1 }
 0x715   : >> { %v864_v19 = vpop.permute.xlu1 %863 }
 0x718   : >> { %v1470_v36 = vpop.f32.mrb[4].mxu0 }
 0x719   : >> { %v1625_v37 = vsel %vm1622_vm5, %v1470_v36, -1e+30  ;;  %v2637_v38 = vpop.f32.mrb[5].mxu0 }
 0x71a   : >> { %v1516_v39 = vpop.f32.mrb[4].mxu1  ;;  %v1629_v40 = vsel %vm1428_vm4, %v1625_v37, -inf  ;;  %v1473_v42 = vpop.f32.mrb[6].mxu0 }
 0x71b   : >> { %v1626_v43 = vsel %vm1622_vm5, %v1516_v39, -1e+30  ;;  %1630 = vmax.xlane.f32.xlu1 %v1629_v40  ;;  %v2643_v44 = vpop.f32.mrb[5].mxu1  ;;  %v2638_v45 = vpop.f32.mrb[7].mxu0 }
 0x71c   : >> { %v1632_v46 = vsel %vm1428_vm4, %v1626_v43, -inf  ;;  %v1519_v47 = vpop.f32.mrb[6].mxu1 }
 0x71d   : >> { %1633 = vmax.xlane.f32.xlu0 %v1632_v46  ;;  %v2644_v48 = vpop.f32.mrb[7].mxu1 }
 0x720   : >> { %v1562_v49 = vpop.f32.mrb[8].mxu0 }
 0x721   : >> { %v3516_v11 = vsel %vm1622_vm5, %v1562_v49, -1e+30  ;;  %v2649_v10 = vpop.f32.mrb[9].mxu0 }
 0x722   : >> { %v1608_v7 = vpop.f32.mrb[8].mxu1  ;;  %v1565_v30 = vpop.f32.mrb[10].mxu0  ;;  %v1635_v16 = vsel %vm1428_vm4, %v3516_v11, -inf }
 0x723   : >> { %v3520_v9 = vsel %vm1622_vm5, %v1608_v7, -1e+30  ;;  %v2655_v12 = vpop.f32.mrb[9].mxu1  ;;  %v2650_v13 = vpop.f32.mrb[11].mxu0 }
 0x724   : >> { %v1611_v14 = vpop.f32.mrb[10].mxu1  ;;  %v1638_v17 = vsel %vm1428_vm4, %v3520_v9, -inf }
 0x725   : >> { %v2656_v15 = vpop.f32.mrb[11].mxu1 }
 0x72c   : >> { %869 = vrot.lane.b32.xlu1 %v770_v25, %s3126_s12  ;;  %s2355_s12 = sshll.u32 (%p3607_p12), %s3811_s27, 4  ;;  %s3732_s12 = int_to_ptr.vmem [resolvable:$true] %s2355_s12 }
 0x733   : >> { %866 = vrot.lane.b32.xlu0 %v770_v25, %s3124_s24  ;;  %s2569_s24 = sshll.u32 (%p3607_p12), %s3052_s16, 7  ;;  %s2930_s16 = scalar_lea.vmem (%p3607_p12), %s3732_s12, 128 }
 0x734   : > { %p2931_p13 = scmp.ne.s32.totalorder (%p3607_p12), %s3732_s12, %s2930_s16 }
 0x736   : > { %p2932_p0 = pnand (%p3607_p12), %p2931_p13, %p3228_p4 }
 0x738   : > { %p2933_p1 = pneg (%p3607_p12), %p2932_p0 }
 0x750   : >> { %1636 = vmax.xlane.f32.xlu1 %v1635_v16 }
 0x752   : >> { %1639 = vmax.xlane.f32.xlu0 %v1638_v17 }
 0x7a8   : >> { %v1631_v20 = vpop.xlane.xlu1 %1630 }
 0x7a9   : >> { %v3529_v21 = vmax.f32 %v3108_v6, %v1631_v20  }
 0x7aa   : >> { %v1634_v22 = vpop.xlane.xlu0 %1633 }
 0x7ab   : >> { %v1645_v24 = vsub.f32 %v3108_v6, %v3529_v21  ;;  %v1657_v26 = vsub.f32 %v1625_v37, %v3529_v21  ;;  %v3535_v28 = vmax.f32 %v3104_v5, %v1634_v22  }
 0x7ac   : >> { %v870_v29 = vpop.permute.xlu1 %869 }
 0x7ad   : >> { %v1661_v32 = vmul.f32 1.442695, %v1657_v26  ;;  %v1646_v33 = vsub.f32 %v3104_v5, %v3535_v28  ;;  %v1658_v34 = vsub.f32 %v1626_v43, %v3535_v28  ;;  %v888_v36 = vcombine.low %v864_v19, %v870_v29 }
 0x7ae   : >> { %v889_v38 = vcombine.high %v864_v19, %v870_v29  ;;  %v867_v39 = vpop.permute.xlu0 %866 }
 0x7af   : >> { %v1663_v40 = vmul.f32 1.442695, %v1658_v34  ;;  %v872_v42 = vcombine.low %v770_v25, %v867_v39  ;;  %2894 = vpow2.f32 %v1661_v32  ;;  %v873_v44 = vcombine.high %v770_v25, %v867_v39 }
 0x7b0   : >> { %v896_v45 = vrot.slane %v888_v36, %v3283_v35  ;;  %v903_v46 = vrot.slane %v889_v38, %v3283_v35 }
 0x7b1   : >> { %v880_v37 = vrot.slane %v872_v42, %v3283_v35  ;;  %2896 = vpow2.f32 %v1663_v40  ;;  %v887_v47 = vrot.slane %v873_v44, %v3283_v35 }
 0x7b3   : >> { %v904_v48 = vcombine.low %v880_v37, %v896_v45  ;;  %v905_v49 = vcombine.high %v880_v37, %v896_v45  ;;  %v920_v10 = vcombine.low %v887_v47, %v903_v46  ;;  %v921_v43 = vcombine.high %v887_v47, %v903_v46 }
 0x7b5   : >> { %v912_v7 = vrot.slane %v904_v48, %v3286_v41  ;;  %v919_v30 = vrot.slane %v905_v49, %v3286_v41  ;;  %v928_v12 = vrot.slane %v920_v10, %v3286_v41  ;;  %v935_v25 = vrot.slane %v921_v43, %v3286_v41 }
 0x7b7   : >> { %v936_v13 = vcombine.high %v912_v7, %v3122_v18  ;;  %v937_v14 = vcombine.high %v919_v30, %v3122_v18  ;;  %v938_v15 = vcombine.high %v928_v12, %v3122_v18  ;;  %v939_v16 = vcombine.high %v935_v25, %v3122_v18 }
 0x7b8   : >> { %v2543_v17 = vpack.c.bf16 %v928_v12, %v912_v7  ;;  %v2544_v19 = vpack.c.bf16 %v935_v25, %v919_v30 }
 0x7b9   : >> { %v2895_v20 = vpop.eup %2894  ;;  %v2545_v29 = vpack.c.bf16 %v938_v15, %v936_v13  ;;  %v2546_v32 = vpack.c.bf16 %v939_v16, %v937_v14 }
 0x7ba   : >> { %v1704_v22 = vrot.slane %v2543_v17, %v3283_v35  ;;  %v1712_v26 = vrot.slane %v2544_v19, %v3283_v35  ;;  %v1673_v34 = vsel %vm1428_vm4, %v2895_v20, 0.0  ;;  %v1693_v14 = vpack.c.bf16 %v2895_v20, %v2895_v20 }
 0x7bb   : >> { %v2897_v36 = vpop.eup %2896  ;;  %v1729_v39 = vrot.slane %v2545_v29, %v3283_v35  ;;  %v1737_v40 = vrot.slane %v2546_v32, %v3283_v35  ;;  %1674 = vadd.xlane.f32.xlu0 %v1673_v34 }
 0x7bc   : >> { %v1713_v38 = vcombine.low %v1704_v22, %v1712_v26  ;;  %v1676_v42 = vsel %vm1428_vm4, %v2897_v36, 0.0  ;;  %v1694_v17 = vpack.c.bf16 %v2897_v36, %v2897_v36 }
 0x7bd   : >> { %1677 = vadd.xlane.f32.xlu1 %v1676_v42  ;;  %v1738_v45 = vcombine.low %v1729_v39, %v1737_v40 }
 0x7be   : >> { %v1720_v44 = vrot.slane %v1713_v38, %v3286_v41 }
 0x7bf   : >> { %v1745_v37 = vrot.slane %v1738_v45, %v3286_v41 }
 0x7c0   : >> { %v1721_v46 = vcombine.high %v1720_v44, %v3128_v23  ;;  %v1750_v48 = vshrl.u32 %v1720_v44, 16 }
 0x7c1   : >> { %v1749_v47 = vpack.i.b16 %v1745_v37, %v1720_v44  ;;  %v1751_v49 = vshrl.u32 %v1745_v37, 16  ;;  %v1746_v10 = vcombine.high %v1745_v37, %v3128_v23 }
 0x7c2   : >> { %v1756_v43 = vshrl.u32 %v1721_v46, 16 }
 0x7c3   : >> { %v1763_v7 = vsel %vm1432_vm3, %v1749_v47, 0  ;;  %v1752_v30 = vpack.i.b16 %v1751_v49, %v1750_v48  ;;  %v1755_v12 = vpack.i.b16 %v1746_v10, %v1721_v46  ;;  %v1757_v25 = vshrl.u32 %v1746_v10, 16 }
 0x7c4   : >> { %2658 = vmatpush3.bf16.msra.mxu0 %v1763_v7 }
 0x7c5   : >> { %v1809_v13 = vsel %vm1432_vm3, %v1752_v30, 0  ;;  %2669 = vmatprep.subr.bf16.mxu0 %v3122_v18  ;;  %v1758_v15 = vpack.i.b16 %v1757_v25, %v1756_v43  ;;  %v1855_v16 = vsel %vm1432_vm3, %v1755_v12, 0 }
 0x7c6   : >> { %2664 = vmatpush3.bf16.msra.mxu1 %v1809_v13 }
 0x7c7   : >> { %2660 = vmatmul.mubr.msk.bf16.vlgmr.msra.gmra.mrb[12].mxu0 %vm1428_vm4, %v1693_v14  ;;  %2675 = vmatprep.subr.bf16.mxu1 %v3122_v18  ;;  %v1901_v23 = vsel %vm1432_vm3, %v1758_v15, 0 }
 0x7c8   : >> { %2670 = vmatpush3.bf16.msra.mxu0 %v1855_v16  ;;  %2671 = vmatprep.mubr.msk.bf16.mxu0 %vm3123_vm2, %v3122_v18 }
 0x7c9   : >> { %2666 = vmatmul.mubr.msk.bf16.vlgmr.msra.gmra.mrb[12].mxu1 %vm1428_vm4, %v1694_v17  ;;  %2681 = vmatprep.subr.bf16.mxu0 (%p3607_p12), %v3114_v8 }
 0x7ca   : >> { %2676 = vmatpush3.bf16.msra.mxu1 %v1901_v23  ;;  %2677 = vmatprep.mubr.msk.bf16.mxu1 %vm3123_vm2, %v3122_v18 }
 0x7cb   : > { %2689 = vmatprep.subr.bf16.mxu1 (%p3607_p12), %v3114_v8 }
 0x7dd   : >> { %v1637_v19 = vpop.xlane.xlu1 %1636 }
 0x7de   : >> { %v3575_v20 = vmax.f32 %v3100_v4, %v1637_v19  }
 0x7df   : >> { %v1640_v22 = vpop.xlane.xlu0 %1639 }
 0x7e0   : >> { %v1647_v26 = vsub.f32 %v3100_v4, %v3575_v20  ;;  %v1659_v29 = vsub.f32 %v3516_v11, %v3575_v20  ;;  %v3582_v32 = vmax.f32 %v3096_v3, %v1640_v22  }
 0x7e2   : >> { %v1665_v34 = vmul.f32 1.442695, %v1659_v29  ;;  %v1648_v36 = vsub.f32 %v3096_v3, %v3582_v32  ;;  %v1660_v18 = vsub.f32 %v3520_v9, %v3582_v32  ;;  %v1649_v3 = vmul.f32 1.442695, %v1645_v24 }
 0x7e3   : >> { %v1651_v9 = vmul.f32 1.442695, %v1646_v33  ;;  %v1653_v7 = vmul.f32 1.442695, %v1647_v26 }
 0x7e4   : >> { %v1667_v38 = vmul.f32 1.442695, %v1660_v18  ;;  %2898 = vpow2.f32 %v1665_v34  ;;  %v1655_v30 = vmul.f32 1.442695, %v1648_v36 }
 0x7e6   : >> { %2900 = vpow2.f32 %v1667_v38 }
 0x7e7   : >> { %2902 = vpow2.f32 %v1649_v3  ;;  %v3807_v3 = vmov %v3582_v32 }
 0x7e8   : >> { %2904 = vpow2.f32 %v1651_v9 }
 0x7e9   : >> { %2906 = vpow2.f32 %v1653_v7 }
 0x7ea   : >> { %2908 = vpow2.f32 %v1655_v30 }
 0x7ee   : >> { %v2899_v39 = vpop.eup %2898 }
 0x7ef   : >> { %v1679_v40 = vsel %vm1428_vm4, %v2899_v39, 0.0  ;;  %v1695_v4 = vpack.c.bf16 %v2899_v39, %v2899_v39 }
 0x7f0   : >> { %v2901_v42 = vpop.eup %2900  ;;  %1680 = vadd.xlane.f32.xlu0 %v1679_v40 }
 0x7f1   : >> { %2672 = vmatmul.mubr.msk.bf16.vlgmr.msra.gmra.mrb[16].mxu0 %vm1428_vm4, %v1695_v4  ;;  %v1682_v11 = vsel %vm1428_vm4, %v2901_v42, 0.0  ;;  %v1696_v44 = vpack.c.bf16 %v2901_v42, %v2901_v42  ;;  %v2903_v45 = vpop.eup %2902 }
 0x7f2   : >> { %1683 = vadd.xlane.f32.xlu1 %v1682_v11  ;;  %v2905_v37 = vpop.eup %2904  ;;  %v1669_v46 = vmul.f32 %v3092_v2, %v2903_v45  ;;  %v1689_v2 = vmul.f32 %v3076_v61, %v2903_v45  ;;  %2685 = vmatprep.mubr.msk.bf16.mxu0 (%p3607_p12), %vm3115_vm1, %v3114_v8 }
 0x7f3   : >> { %2678 = vmatmul.mubr.msk.bf16.vlgmr.msra.gmra.mrb[16].mxu1 %vm1428_vm4, %v1696_v44  ;;  %v1670_v49 = vmul.f32 %v3088_v1, %v2905_v37  ;;  %v2907_v6 = vpop.eup %2906  ;;  %v1690_v17 = vmul.f32 %v3072_v60, %v2905_v37 }
 0x7f4   : >> { %v2909_v24 = vpop.eup %2908  ;;  %v1671_v5 = vmul.f32 %v3084_v63, %v2907_v6  ;;  %v1691_v36 = vmul.f32 %v3068_v59, %v2907_v6  ;;  %v3810_v6 = vmov %v3529_v21  ;;  %2705 = vmatprep.mubr.msk.bf16.mxu1 (%p3607_p12), %vm3115_vm1, %v3114_v8 }
 0x7f5   : >> { %v1672_v25 = vmul.f32 %v3080_v62, %v2909_v24  ;;  %v1692_v39 = vmul.f32 %v3064_v58, %v2909_v24 }
 0x848   : >> { %v1675_v47 = vpop.xlane.xlu0 %1674 }
 0x849   : >> { %v1685_v48 = vadd.f32 %v1675_v47, %v1669_v46  }
 0x84a   : >> { %v1678_v10 = vpop.xlane.xlu1 %1677 }
 0x84b   : >> { %v1686_v43 = vadd.f32 %v1678_v10, %v1670_v49   ;;  %2920 = vrcp.f32 (%p3607_p12), %v1685_v48 }
 0x84d   : > { %2922 = vrcp.f32 (%p3607_p12), %v1686_v43 }
 0x855   : > { %v2921_v21 = vpop.eup (%p3607_p12), %2920 }
 0x87d   : >> { %v1681_v33 = vpop.xlane.xlu0 %1680 }
 0x87e   : >> { %v1687_v12 = vadd.f32 %v1681_v33, %v1671_v5   ;;  %v3809_v5 = vmov %v3535_v28  ;;  %v2923_v28 = vpop.eup (%p3607_p12), %2922 }
 0x87f   : >> { %v1684_v13 = vpop.xlane.xlu1 %1683 }
 0x880   : >> { %v1688_v14 = vadd.f32 %v1684_v13, %v1672_v25   ;;  %2924 = vrcp.f32 (%p3607_p12), %v1687_v12 }
 0x882   : > { %2926 = vrcp.f32 (%p3607_p12), %v1688_v14 }
 0x88a   : > { %v2925_v27 = vpop.eup (%p3607_p12), %2924 }
 0x88c   : > { %v2927_v50 = vpop.eup (%p3607_p12), %2926 }
 0x89a   : >> { %v1799_v15 = vpop.f32.mrb[12].mxu0 }
 0x89b   : >> { %v1943_v16 = vadd.f32 %v1799_v15, %v1689_v2   ;;  %v2661_v1 = vpop.f32.mrb[13].mxu0  ;;  %v3806_v2 = vmov %v1685_v48 }
 0x89c   : >> { %v1802_v23 = vpop.f32.mrb[14].mxu0  ;;  %v1845_v19 = vpop.f32.mrb[12].mxu1  ;;  %v3805_v1 = vmov %v1686_v43 }
 0x89d   : >> { %v1944_v22 = vadd.f32 %v1845_v19, %v1690_v17   ;;  %v2662_v26 = vpop.f32.mrb[15].mxu0  ;;  %v2667_v29 = vpop.f32.mrb[13].mxu1 }
 0x89e   : >> { %v1848_v34 = vpop.f32.mrb[14].mxu1 }
 0x89f   : >> { %v2668_v63 = vpop.f32.mrb[15].mxu1  ;;  %v1956_v31 = vmul.f32 (%p3607_p12), %v2923_v28, %v1944_v22  ;;  %v2917_v28 = vld [vmem:[%s3790_s8 + $0x28] sm:$0xff] (%p3607_p12)  }
 0x8a0   : >> { %v3804_v63 = vmov %v1687_v12 }
 0x8c3   : > { %621 = sbr.rel (!%p3607_p12) target bundleno = 686 (0x2ae), region = 121 }
 0x8c4   : >> { %v1891_v18 = vpop.f32.mrb[16].mxu0 }
 0x8c5   : >> { %v1945_v38 = vadd.f32 %v1891_v18, %v1691_v36   ;;  %v2673_v62 = vpop.f32.mrb[17].mxu0 }
 0x8c6   : >> { %v1894_v61 = vpop.f32.mrb[18].mxu0  ;;  %v1937_v40 = vpop.f32.mrb[16].mxu1  ;;  %v3803_v62 = vmov %v1688_v14 }
 0x8c7   : >> { %v1946_v42 = vadd.f32 %v1937_v40, %v1692_v39   ;;  %v2674_v4 = vpop.f32.mrb[19].mxu0  ;;  %v2679_v11 = vpop.f32.mrb[17].mxu1  ;;  %v3800_v59 = vmov %v1945_v38  ;;  %v3802_v61 = vmov %v1943_v16  ;;  %v1957_v51 = vmul.f32 (%p3607_p12), %v2925_v27, %v1945_v38 }
 0x8c8   : >> { %v1940_v60 = vpop.f32.mrb[18].mxu1  ;;  %v3808_v4 = vmov %v3575_v20  ;;  %v1955_v20 = vmul.f32 (%p3607_p12), %v2921_v21, %v1943_v16  ;;  %v2913_v11 = vld [vmem:[%s3790_s8 + $0x8] sm:$0xff] (%p3607_p12)   ;;  %v2916_v21 = vld [vmem:[%s3790_s8 + $0x20] sm:$0xff] (%p3607_p12)  }
 0x8c9   : >> { %v2680_v44 = vpop.f32.mrb[19].mxu1  ;;  %v3799_v58 = vmov %v1946_v42  ;;  %v3801_v60 = vmov %v1944_v22  ;;  %v1958_v52 = vmul.f32 (%p3607_p12), %v2927_v50, %v1946_v42  ;;  %v2910_v42 = vld [vmem:[%s3788_s6] sm:$0xff] (%p3607_p12)  }
 0x8ca   : > { %v1959_v53 = vcombine.low %v1955_v20, %v1957_v51  ;;  %v1960_v54 = vcombine.high %v1955_v20, %v1957_v51  ;;  %2682 = vmatpush3.bf16.msra.mxu0 %v2910_v42  ;;  %v2912_v4 = vld [vmem:[%s3790_s8] sm:$0xff]   ;;  %v2914_v60 = vld [vmem:[%s3790_s8 + $0x10] sm:$0xff]   ;;  %v2915_v44 = vld [vmem:[%s3790_s8 + $0x18] sm:$0xff]  }
 0x8cb   : > { %v1975_v55 = vcombine.low %v1956_v31, %v1958_v52  ;;  %v1976_v56 = vcombine.high %v1956_v31, %v1958_v52  ;;  %2683 = vmatprep.subr.bf16.mxu0 %v3114_v8  ;;  %2690 = vmatpush3.bf16.msra.mxu1 %v2912_v4  ;;  %v2553_v51 = vld [vmem:[%s3786_s4] ss:$0 sm:$0xff] }
 0x8cc   : > { %v1967_v57 = vrot.slane %v1959_v53, %v3283_v35  ;;  %v1974_v58 = vrot.slane %v1960_v54, %v3283_v35  ;;  %2691 = vmatprep.subr.bf16.mxu1 %v3114_v8  ;;  %v2554_v53 = vld [vmem:[%s3787_s5] ss:$0 sm:$0xff] }
 0x8cd   : > { %v1983_v59 = vrot.slane %v1975_v55, %v3283_v35  ;;  %v1990_v32 = vrot.slane %v1976_v56, %v3283_v35 }
 0x8cf   : > { %v1991_v3 = vcombine.low %v1967_v57, %v1983_v59  ;;  %v1992_v9 = vcombine.high %v1967_v57, %v1983_v59  ;;  %v2007_v45 = vcombine.low %v1974_v58, %v1990_v32  ;;  %v2008_v37 = vcombine.high %v1974_v58, %v1990_v32  ;;  %2692 = vmatpush3.bf16.msra.mxu1 %v2913_v11  ;;  %v2918_v58 = vld [vmem:[%s3790_s8 + $0x30] sm:$0xff]   ;;  %v2919_v59 = vld [vmem:[%s3790_s8 + $0x38] sm:$0xff]   ;;  %v2555_v32 = vld [vmem:[%s3789_s7] ss:$0 sm:$0xff] }
 0x8d0   : > { %2693 = vmatprep.subr.bf16.mxu1 %v3114_v8 }
 0x8d1   : > { %v1999_v46 = vrot.slane %v1991_v3, %v3286_v41  ;;  %v2006_v47 = vrot.slane %v1992_v9, %v3286_v41  ;;  %v2015_v48 = vrot.slane %v2007_v45, %v3286_v41  ;;  %v2022_v49 = vrot.slane %v2008_v37, %v3286_v41 }
 0x8d3   : > { %v2027_v10 = vcombine.low %v1999_v46, %v2006_v47  ;;  %v2551_v43 = vcombine.high %v1999_v46, %v2006_v47  ;;  %v2043_v7 = vcombine.low %v2015_v48, %v2022_v49  ;;  %v2552_v30 = vcombine.high %v2015_v48, %v2022_v49  ;;  %2694 = vmatpush3.bf16.msra.mxu1 %v2914_v60 }
 0x8d4   : > { %2695 = vmatprep.subr.bf16.mxu1 %v3114_v8 }
 0x8d5   : > { %v2034_v6 = vrot.slane %v2027_v10, %v3283_v35  ;;  %v2042_v24 = vrot.slane %v2551_v43, %v3283_v35  ;;  %v2050_v5 = vrot.slane %v2043_v7, %v3283_v35  ;;  %v2058_v33 = vrot.slane %v2552_v30, %v3283_v35 }
 0x8d7   : > { %v2059_v12 = vcombine.low %v2034_v6, %v2042_v24  ;;  %v2075_v25 = vcombine.low %v2050_v5, %v2058_v33  ;;  %v2060_v13 = vcombine.high %v2034_v6, %v2042_v24  ;;  %v2076_v14 = vcombine.high %v2050_v5, %v2058_v33  ;;  %2696 = vmatpush3.bf16.msra.mxu1 %v2915_v44  ;;  %v2567_v5 = vld [vmem:[%s3791_s9] ss:$0 sm:$0xff] }
 0x8d8   : > { %2697 = vmatprep.subr.bf16.mxu1 %v3114_v8 }
 0x8d9   : > { %v2067_v2 = vrot.slane %v2059_v12, %v3286_v41  ;;  %v2083_v15 = vrot.slane %v2075_v25, %v3286_v41  ;;  %v2074_v16 = vrot.slane %v2060_v13, %v3286_v41  ;;  %v2090_v1 = vrot.slane %v2076_v14, %v3286_v41 }
 0x8db   : > { %v2092_v17 = vcombine.high %v2067_v2, %v2083_v15  ;;  %v2094_v23 = vcombine.high %v2074_v16, %v2090_v1  ;;  %v2091_v19 = vcombine.low %v2067_v2, %v2083_v15  ;;  %v2093_v22 = vcombine.low %v2074_v16, %v2090_v1  ;;  %2698 = vmatpush3.bf16.msra.mxu1 %v2916_v21 }
 0x8dc   : > { %2699 = vmatprep.subr.bf16.mxu1 %v3114_v8 }
 0x8dd   : > { %2096 = vrot.lane.b32.xlu0 %v2092_v17, %s3129_s11  ;;  %2104 = vrot.lane.b32.xlu1 %v2094_v23, %s3130_s29  ;;  %s3730_s11 = scalar_lea.hbm %s3792_s10, %s2569_s24  ;;  %s3812_s29 = smov %s3811_s27 }
 0x8de   : > { %s3132_s27 = smov [#allocation5]  }
 0x8df   : > { %2700 = vmatpush3.bf16.msra.mxu1 %v2917_v28  ;;  %s2934_s0 = sshll.u32 %s3132_s27, 4  ;;  %s2935_s0 = int_to_ptr.vmem [resolvable:$false] %s2934_s0 }
 0x8e0   : > { %2701 = vmatprep.subr.bf16.mxu1 %v3114_v8  ;;  %s2936_s24 = scalar_lea.vmem %s2935_s0, 256  ;;  %p2937_p2 = scmp.lt.s32.totalorder %s3732_s12, %s2935_s0 }
 0x8e1   : > { %2100 = vrot.lane.b32.xlu0 %v2093_v22, %s3131_s19  ;;  %s3813_s19 = sand.u32 1, %s3044_s14   ;;  %p2938_p3 = scmp.lt.s32.totalorder %s2936_s24, %s2930_s16 }
 0x8e2   : > { %s2341_s20 = scalar_lea.sflag [#allocation6], %s3813_s19 }
 0x8e3   : > { %2702 = vmatpush3.bf16.msra.mxu1 %v2918_v58  ;;  %p2939_p5 = por %p2938_p3, %p2937_p2 }
 0x8e4   : > { %2703 = vmatprep.subr.bf16.mxu1 %v3114_v8  ;;  %v2217_v8 = vld [vmem:[#allocation4] sm:$0xff] }
 0x8e5   : > { %p2940_p6 = pnand %p2939_p5, %p2933_p1 }
 0x8e7   : > { %2704 = vmatpush3.bf16.msra.mxu1 %v2919_v59 }
 0x94f   : > { %v2097_v35 = vpop.permute.xlu0 %2096  ;;  %v2105_v26 = vpop.permute.xlu1 %2104 }
 0x950   : > { %v2108_v29 = vsel %vm1428_vm4, %v2091_v19, %v2097_v35 }
 0x953   : > { %v2101_v34 = vpop.permute.xlu0 %2100 }
 0x954   : > { %v2110_v63 = vsel %vm2109_vm6, %v2108_v29, %v2101_v34 }
 0x955   : > { %v2112_v36 = vsel %vm2111_vm7, %v2110_v63, %v2105_v26 }
 0x956   : > { %v2113_v41 = vadd.f32 %v2112_v36, %v3251_v0  ;;  %v2911_v0 = vld [vmem:[%s3788_s6 + $0x8] sm:$0xff]  }
 0x957   : > { %2684 = vmatpush3.bf16.msra.mxu0 %v2911_v0 }
 0x958   : > { %2114 = vst.msk [vmem:[#allocation2] sm:$0xff] %vm439_vm0, %v2113_v41  ;;  %v2117_v18 = vsel %vm439_vm0, %v2113_v41, 0.0 }
 0x959   : > { %2118 = vadd.xlane.f32.xlu1 %v2117_v18 }
 0x95f   : > { %v2328_v6 = vld [vmem:[#allocation2] sm:$0xff] }
 0x9e6   : > { %v2119_v38 = vpop.xlane.xlu1 %2118 }
 0x9e7   : > { %v2120_v62 = vmul.f32 0.03125, %v2119_v38 }
 0x9e9   : > { %v2121_v39 = vsub.f32 %v2113_v41, %v2120_v62 }
 0x9eb   : > { %v2122_v61 = vmul.f32 %v2121_v39, %v2121_v39 }
 0x9ed   : > { %v2123_v40 = vsel %vm439_vm0, %v2122_v61, 0.0 }
 0x9ee   : > { %2124 = vadd.xlane.f32.xlu0 %v2123_v40 }
 0xa7b   : > { %v2125_v20 = vpop.xlane.xlu0 %2124 }
 0xa7c   : > { %v2126_v27 = vmul.f32 0.03125, %v2125_v20 }
 0xa7e   : > { %v2127_v31 = vadd.f32 1e-05, %v2126_v27 }
 0xa80   : > { %2928 = vrsqrt.f32 %v2127_v31 }
 0xa8a   : > { %v2929_v50 = vpop.eup %2928 }
 0xa8b   : > { %v2129_v52 = vmul.f32 %v2929_v50, %v2121_v39 }
 0xa8d   : > { %v2136_v54 = vmul.f32 %v2553_v51, %v2129_v52 }
 0xa8f   : > { %v2143_v55 = vadd.f32 %v2554_v53, %v2136_v54 }
 0xa91   : > { %v2144_v56 = vpack.c.bf16 %v2143_v55, %v2143_v55 }
 0xa93   : > { %2146 = vst.msk [vmem:[#allocation3] sm:$0xf] %vm2145_vm8, %v2144_v56 }
 0xa9a   : > { %v2148_v57 = vld [vmem:[#allocation3] sm:$0xf] }
 0xa9b   : > { %2686 = vmatmul.mubr.msk.bf16.vlgmr.msra.gmra.mrb[0].mxu0 %vm439_vm0, %v2148_v57 }
 0xb6e   : > { %v2210_v3 = vpop.f32.mrb[0].mxu0 }
 0xb6f   : > { %v2211_v9 = vadd.f32 %v2555_v32, %v2210_v3  ;;  %v2687_v45 = vpop.f32.mrb[1].mxu0 }
 0xb70   : > { %v2213_v37 = vpop.f32.mrb[2].mxu0 }
 0xb71   : > { %v2216_v46 = vmax.f32 %v2211_v9, 0.0  ;;  %v2688_v47 = vpop.f32.mrb[3].mxu0 }
 0xb73   : > { %v2218_v48 = vpack.c.bf16 %v2216_v46, %v2216_v46 }
 0xb75   : > { %2706 = vmatmul.mubr.bf16.vlgmr.msra.gmra.mrb[0].mxu1 %v2218_v48 }
 0xc48   : > { %v2317_v49 = vpop.f32.mrb[0].mxu1 }
 0xc49   : > { %v2323_v10 = vadd.f32 %v2317_v49, %v2217_v8  ;;  %v2707_v43 = vpop.f32.mrb[1].mxu1 }
 0xc4a   : > { %v2320_v7 = vpop.f32.mrb[2].mxu1 }
 0xc4b   : > { %2324 = vst.msk [vmem:[#allocation4] sm:$0xff] %vm439_vm0, %v2323_v10  ;;  %v2708_v30 = vpop.f32.mrb[3].mxu1 }
 0xc52   : > { %v2329_v24 = vld [vmem:[#allocation4] sm:$0xff] }
 0xc53   : > { %v2330_v33 = vadd.f32 %v2329_v24, %v2328_v6 }
 0xc55   : > { %v2338_v12 = vadd.f32 %v2567_v5, %v2330_v33 }
 0xc57   : > { %2339 = vst.msk [vmem:[%s3812_s29] sm:$0xff] %vm439_vm0, %v2338_v12 }
 0xc58   : > { %2943 = shalt.err (!%p2940_p6)
}
 0xc59   : > { %s2944_s22 = scalar_lea.hbm %s3730_s11, 128  ;;  %s2948_s29 = scalar_lea.hbm %s3792_s10, 256 }
 0xc5a   : > { %p2945_p7 = scmp.ne.s32.totalorder %s3730_s11, %s2944_s22  ;;  %p2949_p11 = scmp.lt.u32.totalorder %s3730_s11, %s3792_s10 }
 0xc5b   : > { %p2950_p12 = scmp.lt.u32.totalorder %s2948_s29, %s2944_s22  ;;  %p2952_p0 = scmp.lt.u32.totalorder %s2944_s22, %s3730_s11 }
 0xc5c   : > { %p2946_p9 = pnand %p2945_p7, %p3228_p4 }
 0xc5d   : > { %p2951_p13 = por %p2950_p12, %p2949_p11 }
 0xc5e   : > { %p2947_p10 = pneg %p2946_p9 }
 0xc5f   : > { %p2953_p1 = por %p2952_p0, %p2951_p13 }
 0xc61   : > { %p2954_p2 = pnand %p2953_p1, %p2947_p10 }
 0xc63   : > { %2957 = shalt.err (!%p2954_p2)
}
 0xc64   : > { %2709 = dma.vmem_to_hbm [thread:$0]  (%p3228_p4), %s3732_s12, 128, %s3730_s11, %s2341_s20  }
 0xc65 PF: > { %p2715_p3 = scmp.ge.s32.totalorder %s3060_s18, 2  ;;  %s2367_s16 = sand.u32 1, %s3040_s13  }
 0xc66   : > { %s2368_s27 = scalar_lea.sflag [#allocation6], %s2367_s16 }
 0xc67   : > { %p2712_p5 = pnand %p2715_p3, %p3235_p8 }
 0xc69   : > { %3035 = dma.done.wait (!%p2712_p5), %s2368_s27, 128  }
 0xc6a   : > { %3037 = vsyncadd (!%p2712_p5), %s2368_s27, 4294967168  ;;  %s23_s18 = sadd.s32 1, %s3060_s18   ;;  %s3814_s13 = smov %s3044_s14 }
 0xc6b   : > { %p20_p6 = scmp.ge.s32.totalorder %s23_s18, 4   ;;  %s3815_s14 = smov %s3048_s15 }
 0xc6c   : > { %s3816_s15 = smov %s3241_s26  ;;  %s3817_s16 = smov %s3056_s17 }
 0xc6d   : > { %s3818_s17 = smov %s3820_s21  ;;  %22 = sbr.rel (!%p20_p6) target bundleno = 6 (0x6), region = 132 }
 0xc74   :  { %2373 = vsyncpa [#allocation6], 1 }
 0xc75   :  { %2375 = vsyncpa [#allocation6 + $0x1], 1 }

</bundles_post_ra>
